<compile_context>
chip_gen: v7x
topology: tpu7x:2x2x1
jax: 0.10.0
libtpu: 0.0.40
codegen_flags: <defaults>
</compile_context>

<pallas_src>
import numpy as np
import jax
import jax.numpy as jnp
from jax.experimental import pallas as pl
from jax.experimental.pallas import tpu as pltpu

B = 2
SEQ_LEN = 8        # configs.seq_len
PRED_LEN = 8       # configs.pred_len
N_VARS = 4         # configs.enc_in (variates == tokens of the inverted embedding)
D_MODEL = 32
N_HEADS = 4
D_FF = 64
E_LAYERS = 2
HEAD_DIM = D_MODEL // N_HEADS          # 8
TOK = B * N_VARS                        # 8  : all variate-tokens of the whole batch
HT = N_HEADS * TOK                      # 32 : head-major attention rows
EPS_NORM = 1e-5
EPS_LN = 1e-5
NEG_BIG = -1e9

SLAB_W = 3 * D_MODEL                    # 96 lanes — widest slab entry (Wqkv)


# ----------------------------------------------------------------------------------------
# Slab layout: matrices first (all row counts are multiples of 8 so every matrix starts at
# an 8-aligned row with zero padding), then all one-row vectors packed densely into a single
# 8-aligned block that the kernel loads once.
# ----------------------------------------------------------------------------------------
def _build_layouts():
    mats = [("w_emb", SEQ_LEN, D_MODEL),
            ("attn_bias", HT, HT)]                      # per-head AND per-batch block-diag mask
    for l in range(E_LAYERS):
        mats += [(f"wqkv{l}", D_MODEL, 3 * D_MODEL),
                 (f"wo{l}",   D_MODEL, D_MODEL),
                 (f"w1{l}",   D_MODEL, D_FF),
                 (f"w2{l}",   D_FF,    D_MODEL)]
    mats.append(("wp", D_MODEL, PRED_LEN))

    vecs = [("b_emb", D_MODEL)]
    for l in range(E_LAYERS):
        vecs += [(f"bqkv{l}", 3 * D_MODEL), (f"bo{l}", D_MODEL),
                 (f"ln1_g{l}", D_MODEL), (f"ln1_b{l}", D_MODEL),
                 (f"ln2_g{l}", D_MODEL), (f"ln2_b{l}", D_MODEL),
                 (f"b1{l}", D_FF), (f"b2{l}", D_MODEL)]
    vecs += [("lnf_g", D_MODEL), ("lnf_b", D_MODEL), ("bp", PRED_LEN)]

    mat_layout, off = {}, 0
    for name, r, c in mats:
        assert r % 8 == 0 and off % 8 == 0
        mat_layout[name] = (off, r, c)
        off += r
    vec_base = off
    vec_layout = {name: (i, c) for i, (name, c) in enumerate(vecs)}
    vec_rows = ((len(vecs) + 7) // 8) * 8
    return mat_layout, vec_layout, vec_base, vec_rows, vec_base + vec_rows


MAT_LAYOUT, VEC_LAYOUT, VEC_BASE, VEC_ROWS, SLAB_ROWS = _build_layouts()


# ----------------------------------------------------------------------------------------
# Kernel
# ----------------------------------------------------------------------------------------
def _layer_norm(x, gamma, beta):
    mu = jnp.mean(x, axis=-1, keepdims=True)
    xc = x - mu
    var = jnp.mean(xc * xc, axis=-1, keepdims=True)
    return xc * jax.lax.rsqrt(var + EPS_LN) * gamma + beta


def itrans_kernel(x_ref, slab_ref, out_ref):
    def mat(name):
        r0, r, c = MAT_LAYOUT[name]
        return slab_ref[r0:r0 + r, 0:c]

    vec_blk = slab_ref[VEC_BASE:VEC_BASE + VEC_ROWS, :]   # one load for every bias / LN param

    def vec(name):
        i, c = VEC_LAYOUT[name]
        return vec_blk[i:i + 1, 0:c]

    x = x_ref[...]                                         # [T, L] tokens x time

    # ---- series normalization per token over time (mean / biased std, as in forecast()) ----
    mean = jnp.mean(x, axis=-1, keepdims=True)
    xc = x - mean
    var = jnp.mean(xc * xc, axis=-1, keepdims=True)        # unbiased=False
    std = jnp.sqrt(var + EPS_NORM)
    xn = xc * jax.lax.rsqrt(var + EPS_NORM)

    # ---- DataEmbedding_inverted (x_mark None): Linear(seq_len -> d_model) over time ----
    h = jnp.dot(xn, mat("w_emb"), preferred_element_type=jnp.float32) + vec("b_emb")   # [T, D]

    attn_bias = mat("attn_bias")                           # [H*T, H*T]: 0 same head+batch, -1e9 else
    nt_dims = (((1,), (1,)), ((), ()))                     # A @ B^T (contract last dims)

    for l in range(E_LAYERS):
        # one dense QKV projection (score scale already folded into Wq / bq host-side)
        qkv = jnp.dot(h, mat(f"wqkv{l}"),
                      preferred_element_type=jnp.float32) + vec(f"bqkv{l}")            # [T, 3D]

        # heads along sublanes: [H*T, E] built from static lane slices + sublane concat
        qp = jnp.concatenate(
            [qkv[:, hh * HEAD_DIM:(hh + 1) * HEAD_DIM] for hh in range(N_HEADS)], axis=0)
        kp = jnp.concatenate(
            [qkv[:, D_MODEL + hh * HEAD_DIM:D_MODEL + (hh + 1) * HEAD_DIM]
             for hh in range(N_HEADS)], axis=0)
        vp = jnp.concatenate(
            [qkv[:, 2 * D_MODEL + hh * HEAD_DIM:2 * D_MODEL + (hh + 1) * HEAD_DIM]
             for hh in range(N_HEADS)], axis=0)

        # one matmul for all heads' scores; block-diagonal bias kills cross-head/cross-batch
        s = jax.lax.dot_general(qp, kp, nt_dims,
                                preferred_element_type=jnp.float32) + attn_bias        # [HT, HT]
        m = jnp.max(s, axis=-1, keepdims=True)
        p = jnp.exp(s - m)                                  # masked entries underflow to 0
        p = p * pl.reciprocal(jnp.sum(p, axis=-1, keepdims=True), approx=True)
        op = jnp.dot(p, vp, preferred_element_type=jnp.float32)                        # [HT, E]

        # merge heads back to [T, H*E] (sublane slices + lane concat), one output projection
        o = jnp.concatenate([op[hh * TOK:(hh + 1) * TOK, :] for hh in range(N_HEADS)], axis=1)
        a = jnp.dot(o, mat(f"wo{l}"), preferred_element_type=jnp.float32) + vec(f"bo{l}")

        # EncoderLayer: x = norm1(x + attn(x)); y = FFN(x); out = norm2(x + y)  (dropout = id)
        h = _layer_norm(h + a, vec(f"ln1_g{l}"), vec(f"ln1_b{l}"))
        y = jnp.dot(h, mat(f"w1{l}"), preferred_element_type=jnp.float32) + vec(f"b1{l}")
        y = jnp.maximum(y, 0.0)                             # activation = relu
        y = jnp.dot(y, mat(f"w2{l}"), preferred_element_type=jnp.float32) + vec(f"b2{l}")
        h = _layer_norm(h + y, vec(f"ln2_g{l}"), vec(f"ln2_b{l}"))

    # ---- Encoder final LayerNorm ----
    h = _layer_norm(h, vec("lnf_g"), vec("lnf_b"))

    # ---- projection Linear(d_model -> pred_len) + de-normalization (token-major) ----
    proj = jnp.dot(h, mat("wp"), preferred_element_type=jnp.float32) + vec("bp")        # [T, P]
    out_ref[...] = proj * std + mean


# ----------------------------------------------------------------------------------------
# Wrapper: layout plumbing (token packing / final permute) stays in plain JAX.
# ----------------------------------------------------------------------------------------
@jax.jit
def itrans_forward(x_enc, slab):
    x_tok = jnp.transpose(x_enc, (0, 2, 1)).reshape(TOK, SEQ_LEN)              # [B*N, L]
    vmem_spec = pl.BlockSpec(memory_space=pltpu.MemorySpace.VMEM)
    out_tok = pl.pallas_call(
        itrans_kernel,
        out_shape=jax.ShapeDtypeStruct((TOK, PRED_LEN), jnp.float32),
        in_specs=[vmem_spec, vmem_spec],
        out_specs=vmem_spec,
    )(x_tok, slab)
    return jnp.transpose(out_tok.reshape(B, N_VARS, PRED_LEN), (0, 2, 1))      # [B, P, N]


# ----------------------------------------------------------------------------------------
# Parameters (stored [in, out] so y = x @ W + b, matching torch's y = x @ W.T + b)
# ----------------------------------------------------------------------------------------
def init_params(key):
    ks = jax.random.split(key, 16)
    s = 0.1

    def rnd(k, shape):
        return (jax.random.normal(k, shape, jnp.float32) * s).astype(jnp.float32)

    p = {}
    p["w_emb"] = rnd(ks[0], (SEQ_LEN, D_MODEL))
    p["b_emb"] = rnd(ks[1], (1, D_MODEL))
    p["wq"] = rnd(ks[2], (E_LAYERS, D_MODEL, D_MODEL))
    p["bq"] = rnd(ks[3], (E_LAYERS, 1, D_MODEL))
    p["wk"] = rnd(ks[4], (E_LAYERS, D_MODEL, D_MODEL))
    p["bk"] = rnd(ks[5], (E_LAYERS, 1, D_MODEL))
    p["wv"] = rnd(ks[6], (E_LAYERS, D_MODEL, D_MODEL))
    p["bv"] = rnd(ks[7], (E_LAYERS, 1, D_MODEL))
    p["wo"] = rnd(ks[8], (E_LAYERS, D_MODEL, D_MODEL))
    p["bo"] = rnd(ks[9], (E_LAYERS, 1, D_MODEL))
    p["ln1_g"] = jnp.ones((E_LAYERS, 1, D_MODEL), jnp.float32)
    p["ln1_b"] = jnp.zeros((E_LAYERS, 1, D_MODEL), jnp.float32)
    p["ln2_g"] = jnp.ones((E_LAYERS, 1, D_MODEL), jnp.float32)
    p["ln2_b"] = jnp.zeros((E_LAYERS, 1, D_MODEL), jnp.float32)
    p["w1"] = rnd(ks[10], (E_LAYERS, D_MODEL, D_FF))       # Conv1d(k=1) == per-token Linear
    p["b1"] = rnd(ks[11], (E_LAYERS, 1, D_FF))
    p["w2"] = rnd(ks[12], (E_LAYERS, D_FF, D_MODEL))
    p["b2"] = rnd(ks[13], (E_LAYERS, 1, D_MODEL))
    p["lnf_g"] = jnp.ones((1, D_MODEL), jnp.float32)
    p["lnf_b"] = jnp.zeros((1, D_MODEL), jnp.float32)
    p["wp"] = rnd(ks[14], (D_MODEL, PRED_LEN))
    p["bp"] = rnd(ks[15], (1, PRED_LEN))
    return p


def pack_params(p):
    """Host-side packing of all parameters into one dense [SLAB_ROWS, 96] f32 slab."""
    scale = 1.0 / float(np.sqrt(HEAD_DIM))
    slab = np.zeros((SLAB_ROWS, SLAB_W), np.float32)

    def put_mat(name, arr):
        arr = np.asarray(arr, np.float32)
        r0, r, c = MAT_LAYOUT[name]
        assert arr.shape == (r, c), (name, arr.shape, (r, c))
        slab[r0:r0 + r, 0:c] = arr

    def put_vec(name, arr):
        arr = np.asarray(arr, np.float32).reshape(-1)
        i, c = VEC_LAYOUT[name]
        assert arr.shape == (c,), (name, arr.shape, c)
        slab[VEC_BASE + i, 0:c] = arr

    put_mat("w_emb", p["w_emb"])
    put_vec("b_emb", p["b_emb"])

    # extended additive attention bias over head-major rows r = head*TOK + token:
    # 0 iff same head AND same batch element, -1e9 otherwise.
    r = np.arange(HT)
    head = r // TOK
    batch = (r % TOK) // N_VARS
    same = (head[:, None] == head[None, :]) & (batch[:, None] == batch[None, :])
    put_mat("attn_bias", np.where(same, 0.0, NEG_BIG).astype(np.float32))

    for l in range(E_LAYERS):
        wq = np.asarray(p["wq"][l]) * scale                 # fold 1/sqrt(E) into q
        bq = np.asarray(p["bq"][l]) * scale
        put_mat(f"wqkv{l}", np.concatenate([wq, np.asarray(p["wk"][l]),
                                            np.asarray(p["wv"][l])], axis=1))
        put_vec(f"bqkv{l}", np.concatenate([bq, np.asarray(p["bk"][l]),
                                            np.asarray(p["bv"][l])], axis=1))
        put_mat(f"wo{l}", p["wo"][l]); put_vec(f"bo{l}", p["bo"][l])
        put_vec(f"ln1_g{l}", p["ln1_g"][l]); put_vec(f"ln1_b{l}", p["ln1_b"][l])
        put_vec(f"ln2_g{l}", p["ln2_g"][l]); put_vec(f"ln2_b{l}", p["ln2_b"][l])
        put_mat(f"w1{l}", p["w1"][l]); put_vec(f"b1{l}", p["b1"][l])
        put_mat(f"w2{l}", p["w2"][l]); put_vec(f"b2{l}", p["b2"][l])

    put_vec("lnf_g", p["lnf_g"]); put_vec("lnf_b", p["lnf_b"])
    put_mat("wp", p["wp"]); put_vec("bp", p["bp"])
    return jnp.asarray(slab)


# ----------------------------------------------------------------------------------------
# Pure-JAX reference mirroring the PyTorch forecast() path, for verification.
# ----------------------------------------------------------------------------------------
def itrans_reference(x_enc, p):
    mean = jnp.mean(x_enc, axis=1, keepdims=True)
    xc = x_enc - mean
    var = jnp.mean(xc * xc, axis=1, keepdims=True)
    std = jnp.sqrt(var + EPS_NORM)
    xn = xc / std                                               # [B, L, N]

    h = jnp.einsum("bln,ld->bnd", xn, p["w_emb"]) + p["b_emb"][0]    # [B, N, D]

    def ln(x, g, b):
        mu = jnp.mean(x, axis=-1, keepdims=True)
        c = x - mu
        v = jnp.mean(c * c, axis=-1, keepdims=True)
        return c * jax.lax.rsqrt(v + EPS_LN) * g + b

    scale = 1.0 / (HEAD_DIM ** 0.5)
    for l in range(E_LAYERS):
        q = h @ p["wq"][l] + p["bq"][l][0]
        k = h @ p["wk"][l] + p["bk"][l][0]
        v = h @ p["wv"][l] + p["bv"][l][0]
        Bc, Nc, _ = h.shape
        qh = q.reshape(Bc, Nc, N_HEADS, HEAD_DIM)
        kh = k.reshape(Bc, Nc, N_HEADS, HEAD_DIM)
        vh = v.reshape(Bc, Nc, N_HEADS, HEAD_DIM)
        s = jnp.einsum("bnhe,bmhe->bhnm", qh, kh) * scale
        a = jax.nn.softmax(s, axis=-1)
        o = jnp.einsum("bhnm,bmhe->bnhe", a, vh).reshape(Bc, Nc, D_MODEL)
        o = o @ p["wo"][l] + p["bo"][l][0]
        h = ln(h + o, p["ln1_g"][l][0], p["ln1_b"][l][0])
        y = jnp.maximum(h @ p["w1"][l] + p["b1"][l][0], 0.0)
        y = y @ p["w2"][l] + p["b2"][l][0]
        h = ln(h + y, p["ln2_g"][l][0], p["ln2_b"][l][0])

    h = ln(h, p["lnf_g"][0], p["lnf_b"][0])
    proj = h @ p["wp"] + p["bp"][0]                             # [B, N, P]
    dec = jnp.transpose(proj, (0, 2, 1))                        # [B, P, N]
    dec = dec * std + mean
    return dec


if __name__ == "__main__":
    key = jax.random.PRNGKey(0)
    kx, kp = jax.random.split(key)
    x_enc = jax.random.normal(kx, (B, SEQ_LEN, N_VARS), jnp.float32)
    params = init_params(kp)
    slab = pack_params(params)

    out = itrans_forward(x_enc, slab)
    out = jax.block_until_ready(out)

    ref = itrans_reference(x_enc, params)
    assert out.shape == (B, PRED_LEN, N_VARS)
    # tolerance accounts for the approximate EUP reciprocal used in the softmax denominator
    np.testing.assert_allclose(np.asarray(out), np.asarray(ref), rtol=2e-3, atol=2e-3)
    print("KERNEL_OK")
</pallas_src>

<mosaic_0001>
module attributes {stable_mosaic.version = 11 : i64} {
  func.func @itrans_kernel(%arg0: memref<8x8xf32, #tpu.memory_space<vmem>>, %arg1: memref<416x96xf32, #tpu.memory_space<vmem>>, %arg2: memref<8x8xf32, #tpu.memory_space<vmem>>) attributes {dimension_semantics = [], scalar_prefetch = 0 : i64, scratch_operands = 0 : i64, tpu.core_type = #tpu.core_type<tc>} {
    %c392 = arith.constant 392 : index
    %c0 = arith.constant 0 : index
    %0 = vector.load %arg1[%c392, %c0] : memref<416x96xf32, #tpu.memory_space<vmem>>, vector<24x96xf32>
    %c0_0 = arith.constant 0 : index
    %c0_1 = arith.constant 0 : index
    %1 = vector.load %arg0[%c0_0, %c0_1] : memref<8x8xf32, #tpu.memory_space<vmem>>, vector<8x8xf32>
    %cst = arith.constant dense<0.000000e+00> : vector<8xf32>
    %2 = vector.multi_reduction <add>, %1, %cst [1] : vector<8x8xf32> to vector<8xf32>
    %3 = vector.shape_cast %2 : vector<8xf32> to vector<8x1xf32>
    %cst_2 = arith.constant 8.000000e+00 : f32
    %4 = vector.broadcast %cst_2 : f32 to vector<8x1xf32>
    %5 = arith.divf %3, %4 : vector<8x1xf32>
    %6 = vector.broadcast %5 : vector<8x1xf32> to vector<8x8xf32>
    %7 = arith.subf %1, %6 : vector<8x8xf32>
    %8 = arith.mulf %7, %7 : vector<8x8xf32>
    %cst_3 = arith.constant dense<0.000000e+00> : vector<8xf32>
    %9 = vector.multi_reduction <add>, %8, %cst_3 [1] : vector<8x8xf32> to vector<8xf32>
    %10 = vector.shape_cast %9 : vector<8xf32> to vector<8x1xf32>
    %cst_4 = arith.constant 8.000000e+00 : f32
    %11 = vector.broadcast %cst_4 : f32 to vector<8x1xf32>
    %12 = arith.divf %10, %11 : vector<8x1xf32>
    %cst_5 = arith.constant 9.99999974E-6 : f32
    %13 = vector.broadcast %cst_5 : f32 to vector<8x1xf32>
    %14 = arith.addf %12, %13 : vector<8x1xf32>
    %15 = math.sqrt %14 : vector<8x1xf32>
    %cst_6 = arith.constant 9.99999974E-6 : f32
    %16 = vector.broadcast %cst_6 : f32 to vector<8x1xf32>
    %17 = arith.addf %12, %16 : vector<8x1xf32>
    %18 = math.rsqrt %17 : vector<8x1xf32>
    %19 = vector.broadcast %18 : vector<8x1xf32> to vector<8x8xf32>
    %20 = arith.mulf %7, %19 : vector<8x8xf32>
    %c0_7 = arith.constant 0 : index
    %c0_8 = arith.constant 0 : index
    %21 = vector.load %arg1[%c0_7, %c0_8] : memref<416x96xf32, #tpu.memory_space<vmem>>, vector<8x32xf32>
    %cst_9 = arith.constant dense<0.000000e+00> : vector<8x32xf32>
    %22 = tpu.matmul %20, %21, %cst_9 {dimension_numbers = #tpu.dot_dimension_numbers<[1], [0], [0], [1], [0, 0, 1, 1], [], []>} : vector<8x8xf32>, vector<8x32xf32>, vector<8x32xf32> -> vector<8x32xf32>
    %23 = vector.extract_strided_slice %0 {offsets = [0, 0], sizes = [1, 32], strides = [1, 1]} : vector<24x96xf32> to vector<1x32xf32>
    %24 = vector.broadcast %23 : vector<1x32xf32> to vector<8x32xf32>
    %25 = arith.addf %22, %24 : vector<8x32xf32>
    %c8 = arith.constant 8 : index
    %c0_10 = arith.constant 0 : index
    %26 = vector.load %arg1[%c8, %c0_10] : memref<416x96xf32, #tpu.memory_space<vmem>>, vector<32x32xf32>
    %c40 = arith.constant 40 : index
    %c0_11 = arith.constant 0 : index
    %27 = vector.load %arg1[%c40, %c0_11] : memref<416x96xf32, #tpu.memory_space<vmem>>, vector<32x96xf32>
    %cst_12 = arith.constant dense<0.000000e+00> : vector<8x96xf32>
    %28 = tpu.matmul %25, %27, %cst_12 {dimension_numbers = #tpu.dot_dimension_numbers<[1], [0], [0], [1], [0, 0, 1, 1], [], []>} : vector<8x32xf32>, vector<32x96xf32>, vector<8x96xf32> -> vector<8x96xf32>
    %29 = vector.extract_strided_slice %0 {offsets = [1, 0], sizes = [1, 96], strides = [1, 1]} : vector<24x96xf32> to vector<1x96xf32>
    %30 = vector.broadcast %29 : vector<1x96xf32> to vector<8x96xf32>
    %31 = arith.addf %28, %30 : vector<8x96xf32>
    %32 = vector.extract_strided_slice %31 {offsets = [0, 0], sizes = [8, 8], strides = [1, 1]} : vector<8x96xf32> to vector<8x8xf32>
    %33 = vector.extract_strided_slice %31 {offsets = [0, 8], sizes = [8, 8], strides = [1, 1]} : vector<8x96xf32> to vector<8x8xf32>
    %34 = vector.extract_strided_slice %31 {offsets = [0, 16], sizes = [8, 8], strides = [1, 1]} : vector<8x96xf32> to vector<8x8xf32>
    %35 = vector.extract_strided_slice %31 {offsets = [0, 24], sizes = [8, 8], strides = [1, 1]} : vector<8x96xf32> to vector<8x8xf32>
    %36 = tpu.concatenate %32, %33, %34, %35 in 0 : vector<8x8xf32>, vector<8x8xf32>, vector<8x8xf32>, vector<8x8xf32> -> vector<32x8xf32>
    %37 = vector.extract_strided_slice %31 {offsets = [0, 32], sizes = [8, 8], strides = [1, 1]} : vector<8x96xf32> to vector<8x8xf32>
    %38 = vector.extract_strided_slice %31 {offsets = [0, 40], sizes = [8, 8], strides = [1, 1]} : vector<8x96xf32> to vector<8x8xf32>
    %39 = vector.extract_strided_slice %31 {offsets = [0, 48], sizes = [8, 8], strides = [1, 1]} : vector<8x96xf32> to vector<8x8xf32>
    %40 = vector.extract_strided_slice %31 {offsets = [0, 56], sizes = [8, 8], strides = [1, 1]} : vector<8x96xf32> to vector<8x8xf32>
    %41 = tpu.concatenate %37, %38, %39, %40 in 0 : vector<8x8xf32>, vector<8x8xf32>, vector<8x8xf32>, vector<8x8xf32> -> vector<32x8xf32>
    %42 = vector.extract_strided_slice %31 {offsets = [0, 64], sizes = [8, 8], strides = [1, 1]} : vector<8x96xf32> to vector<8x8xf32>
    %43 = vector.extract_strided_slice %31 {offsets = [0, 72], sizes = [8, 8], strides = [1, 1]} : vector<8x96xf32> to vector<8x8xf32>
    %44 = vector.extract_strided_slice %31 {offsets = [0, 80], sizes = [8, 8], strides = [1, 1]} : vector<8x96xf32> to vector<8x8xf32>
    %45 = vector.extract_strided_slice %31 {offsets = [0, 88], sizes = [8, 8], strides = [1, 1]} : vector<8x96xf32> to vector<8x8xf32>
    %46 = tpu.concatenate %42, %43, %44, %45 in 0 : vector<8x8xf32>, vector<8x8xf32>, vector<8x8xf32>, vector<8x8xf32> -> vector<32x8xf32>
    %cst_13 = arith.constant dense<0.000000e+00> : vector<32x32xf32>
    %47 = tpu.matmul %36, %41, %cst_13 {dimension_numbers = #tpu.dot_dimension_numbers<[1], [1], [0], [0], [0, 0, 1, 0], [], []>} : vector<32x8xf32>, vector<32x8xf32>, vector<32x32xf32> -> vector<32x32xf32>
    %48 = arith.addf %47, %26 : vector<32x32xf32>
    %cst_14 = arith.constant dense<0xFF800000> : vector<32xf32>
    %49 = vector.multi_reduction <maximumf>, %48, %cst_14 [1] : vector<32x32xf32> to vector<32xf32>
    %50 = vector.shape_cast %49 : vector<32xf32> to vector<32x1xf32>
    %51 = vector.broadcast %50 : vector<32x1xf32> to vector<32x32xf32>
    %52 = arith.subf %48, %51 : vector<32x32xf32>
    %53 = math.exp %52 : vector<32x32xf32>
    %cst_15 = arith.constant dense<0.000000e+00> : vector<32xf32>
    %54 = vector.multi_reduction <add>, %53, %cst_15 [1] : vector<32x32xf32> to vector<32xf32>
    %55 = vector.shape_cast %54 : vector<32xf32> to vector<32x1xf32>
    %56 = tpu.reciprocal %55 {approx = true} : vector<32x1xf32> -> vector<32x1xf32>
    %57 = vector.broadcast %56 : vector<32x1xf32> to vector<32x32xf32>
    %58 = arith.mulf %53, %57 : vector<32x32xf32>
    %cst_16 = arith.constant dense<0.000000e+00> : vector<32x8xf32>
    %59 = tpu.matmul %58, %46, %cst_16 {dimension_numbers = #tpu.dot_dimension_numbers<[1], [0], [0], [1], [0, 0, 1, 1], [], []>} : vector<32x32xf32>, vector<32x8xf32>, vector<32x8xf32> -> vector<32x8xf32>
    %60 = vector.extract_strided_slice %59 {offsets = [0, 0], sizes = [8, 8], strides = [1, 1]} : vector<32x8xf32> to vector<8x8xf32>
    %61 = vector.extract_strided_slice %59 {offsets = [8, 0], sizes = [8, 8], strides = [1, 1]} : vector<32x8xf32> to vector<8x8xf32>
    %62 = vector.extract_strided_slice %59 {offsets = [16, 0], sizes = [8, 8], strides = [1, 1]} : vector<32x8xf32> to vector<8x8xf32>
    %63 = vector.extract_strided_slice %59 {offsets = [24, 0], sizes = [8, 8], strides = [1, 1]} : vector<32x8xf32> to vector<8x8xf32>
    %64 = tpu.concatenate %60, %61, %62, %63 in 1 : vector<8x8xf32>, vector<8x8xf32>, vector<8x8xf32>, vector<8x8xf32> -> vector<8x32xf32>
    %c72 = arith.constant 72 : index
    %c0_17 = arith.constant 0 : index
    %65 = vector.load %arg1[%c72, %c0_17] : memref<416x96xf32, #tpu.memory_space<vmem>>, vector<32x32xf32>
    %cst_18 = arith.constant dense<0.000000e+00> : vector<8x32xf32>
    %66 = tpu.matmul %64, %65, %cst_18 {dimension_numbers = #tpu.dot_dimension_numbers<[1], [0], [0], [1], [0, 0, 1, 1], [], []>} : vector<8x32xf32>, vector<32x32xf32>, vector<8x32xf32> -> vector<8x32xf32>
    %67 = vector.extract_strided_slice %0 {offsets = [2, 0], sizes = [1, 32], strides = [1, 1]} : vector<24x96xf32> to vector<1x32xf32>
    %68 = vector.broadcast %67 : vector<1x32xf32> to vector<8x32xf32>
    %69 = arith.addf %66, %68 : vector<8x32xf32>
    %70 = arith.addf %25, %69 : vector<8x32xf32>
    %71 = vector.extract_strided_slice %0 {offsets = [3, 0], sizes = [1, 32], strides = [1, 1]} : vector<24x96xf32> to vector<1x32xf32>
    %72 = vector.extract_strided_slice %0 {offsets = [4, 0], sizes = [1, 32], strides = [1, 1]} : vector<24x96xf32> to vector<1x32xf32>
    %cst_19 = arith.constant dense<0.000000e+00> : vector<8xf32>
    %73 = vector.multi_reduction <add>, %70, %cst_19 [1] : vector<8x32xf32> to vector<8xf32>
    %74 = vector.shape_cast %73 : vector<8xf32> to vector<8x1xf32>
    %cst_20 = arith.constant 3.200000e+01 : f32
    %75 = vector.broadcast %cst_20 : f32 to vector<8x1xf32>
    %76 = arith.divf %74, %75 : vector<8x1xf32>
    %77 = vector.broadcast %76 : vector<8x1xf32> to vector<8x32xf32>
    %78 = arith.subf %70, %77 : vector<8x32xf32>
    %79 = arith.mulf %78, %78 : vector<8x32xf32>
    %cst_21 = arith.constant dense<0.000000e+00> : vector<8xf32>
    %80 = vector.multi_reduction <add>, %79, %cst_21 [1] : vector<8x32xf32> to vector<8xf32>
    %81 = vector.shape_cast %80 : vector<8xf32> to vector<8x1xf32>
    %cst_22 = arith.constant 3.200000e+01 : f32
    %82 = vector.broadcast %cst_22 : f32 to vector<8x1xf32>
    %83 = arith.divf %81, %82 : vector<8x1xf32>
    %cst_23 = arith.constant 9.99999974E-6 : f32
    %84 = vector.broadcast %cst_23 : f32 to vector<8x1xf32>
    %85 = arith.addf %83, %84 : vector<8x1xf32>
    %86 = math.rsqrt %85 : vector<8x1xf32>
    %87 = vector.broadcast %86 : vector<8x1xf32> to vector<8x32xf32>
    %88 = arith.mulf %78, %87 : vector<8x32xf32>
    %89 = vector.broadcast %71 : vector<1x32xf32> to vector<8x32xf32>
    %90 = arith.mulf %88, %89 : vector<8x32xf32>
    %91 = vector.broadcast %72 : vector<1x32xf32> to vector<8x32xf32>
    %92 = arith.addf %90, %91 : vector<8x32xf32>
    %c104 = arith.constant 104 : index
    %c0_24 = arith.constant 0 : index
    %93 = vector.load %arg1[%c104, %c0_24] : memref<416x96xf32, #tpu.memory_space<vmem>>, vector<32x64xf32>
    %cst_25 = arith.constant dense<0.000000e+00> : vector<8x64xf32>
    %94 = tpu.matmul %92, %93, %cst_25 {dimension_numbers = #tpu.dot_dimension_numbers<[1], [0], [0], [1], [0, 0, 1, 1], [], []>} : vector<8x32xf32>, vector<32x64xf32>, vector<8x64xf32> -> vector<8x64xf32>
    %95 = vector.extract_strided_slice %0 {offsets = [7, 0], sizes = [1, 64], strides = [1, 1]} : vector<24x96xf32> to vector<1x64xf32>
    %96 = vector.broadcast %95 : vector<1x64xf32> to vector<8x64xf32>
    %97 = arith.addf %94, %96 : vector<8x64xf32>
    %cst_26 = arith.constant 0.000000e+00 : f32
    %98 = vector.broadcast %cst_26 : f32 to vector<8x64xf32>
    %99 = arith.maximumf %97, %98 : vector<8x64xf32>
    %c136 = arith.constant 136 : index
    %c0_27 = arith.constant 0 : index
    %100 = vector.load %arg1[%c136, %c0_27] : memref<416x96xf32, #tpu.memory_space<vmem>>, vector<64x32xf32>
    %cst_28 = arith.constant dense<0.000000e+00> : vector<8x32xf32>
    %101 = tpu.matmul %99, %100, %cst_28 {dimension_numbers = #tpu.dot_dimension_numbers<[1], [0], [0], [1], [0, 0, 1, 1], [], []>} : vector<8x64xf32>, vector<64x32xf32>, vector<8x32xf32> -> vector<8x32xf32>
    %102 = vector.extract_strided_slice %0 {offsets = [8, 0], sizes = [1, 32], strides = [1, 1]} : vector<24x96xf32> to vector<1x32xf32>
    %103 = vector.broadcast %102 : vector<1x32xf32> to vector<8x32xf32>
    %104 = arith.addf %101, %103 : vector<8x32xf32>
    %105 = arith.addf %92, %104 : vector<8x32xf32>
    %106 = vector.extract_strided_slice %0 {offsets = [5, 0], sizes = [1, 32], strides = [1, 1]} : vector<24x96xf32> to vector<1x32xf32>
    %107 = vector.extract_strided_slice %0 {offsets = [6, 0], sizes = [1, 32], strides = [1, 1]} : vector<24x96xf32> to vector<1x32xf32>
    %cst_29 = arith.constant dense<0.000000e+00> : vector<8xf32>
    %108 = vector.multi_reduction <add>, %105, %cst_29 [1] : vector<8x32xf32> to vector<8xf32>
    %109 = vector.shape_cast %108 : vector<8xf32> to vector<8x1xf32>
    %cst_30 = arith.constant 3.200000e+01 : f32
    %110 = vector.broadcast %cst_30 : f32 to vector<8x1xf32>
    %111 = arith.divf %109, %110 : vector<8x1xf32>
    %112 = vector.broadcast %111 : vector<8x1xf32> to vector<8x32xf32>
    %113 = arith.subf %105, %112 : vector<8x32xf32>
    %114 = arith.mulf %113, %113 : vector<8x32xf32>
    %cst_31 = arith.constant dense<0.000000e+00> : vector<8xf32>
    %115 = vector.multi_reduction <add>, %114, %cst_31 [1] : vector<8x32xf32> to vector<8xf32>
    %116 = vector.shape_cast %115 : vector<8xf32> to vector<8x1xf32>
    %cst_32 = arith.constant 3.200000e+01 : f32
    %117 = vector.broadcast %cst_32 : f32 to vector<8x1xf32>
    %118 = arith.divf %116, %117 : vector<8x1xf32>
    %cst_33 = arith.constant 9.99999974E-6 : f32
    %119 = vector.broadcast %cst_33 : f32 to vector<8x1xf32>
    %120 = arith.addf %118, %119 : vector<8x1xf32>
    %121 = math.rsqrt %120 : vector<8x1xf32>
    %122 = vector.broadcast %121 : vector<8x1xf32> to vector<8x32xf32>
    %123 = arith.mulf %113, %122 : vector<8x32xf32>
    %124 = vector.broadcast %106 : vector<1x32xf32> to vector<8x32xf32>
    %125 = arith.mulf %123, %124 : vector<8x32xf32>
    %126 = vector.broadcast %107 : vector<1x32xf32> to vector<8x32xf32>
    %127 = arith.addf %125, %126 : vector<8x32xf32>
    %c200 = arith.constant 200 : index
    %c0_34 = arith.constant 0 : index
    %128 = vector.load %arg1[%c200, %c0_34] : memref<416x96xf32, #tpu.memory_space<vmem>>, vector<32x96xf32>
    %cst_35 = arith.constant dense<0.000000e+00> : vector<8x96xf32>
    %129 = tpu.matmul %127, %128, %cst_35 {dimension_numbers = #tpu.dot_dimension_numbers<[1], [0], [0], [1], [0, 0, 1, 1], [], []>} : vector<8x32xf32>, vector<32x96xf32>, vector<8x96xf32> -> vector<8x96xf32>
    %130 = vector.extract_strided_slice %0 {offsets = [9, 0], sizes = [1, 96], strides = [1, 1]} : vector<24x96xf32> to vector<1x96xf32>
    %131 = vector.broadcast %130 : vector<1x96xf32> to vector<8x96xf32>
    %132 = arith.addf %129, %131 : vector<8x96xf32>
    %133 = vector.extract_strided_slice %132 {offsets = [0, 0], sizes = [8, 8], strides = [1, 1]} : vector<8x96xf32> to vector<8x8xf32>
    %134 = vector.extract_strided_slice %132 {offsets = [0, 8], sizes = [8, 8], strides = [1, 1]} : vector<8x96xf32> to vector<8x8xf32>
    %135 = vector.extract_strided_slice %132 {offsets = [0, 16], sizes = [8, 8], strides = [1, 1]} : vector<8x96xf32> to vector<8x8xf32>
    %136 = vector.extract_strided_slice %132 {offsets = [0, 24], sizes = [8, 8], strides = [1, 1]} : vector<8x96xf32> to vector<8x8xf32>
    %137 = tpu.concatenate %133, %134, %135, %136 in 0 : vector<8x8xf32>, vector<8x8xf32>, vector<8x8xf32>, vector<8x8xf32> -> vector<32x8xf32>
    %138 = vector.extract_strided_slice %132 {offsets = [0, 32], sizes = [8, 8], strides = [1, 1]} : vector<8x96xf32> to vector<8x8xf32>
    %139 = vector.extract_strided_slice %132 {offsets = [0, 40], sizes = [8, 8], strides = [1, 1]} : vector<8x96xf32> to vector<8x8xf32>
    %140 = vector.extract_strided_slice %132 {offsets = [0, 48], sizes = [8, 8], strides = [1, 1]} : vector<8x96xf32> to vector<8x8xf32>
    %141 = vector.extract_strided_slice %132 {offsets = [0, 56], sizes = [8, 8], strides = [1, 1]} : vector<8x96xf32> to vector<8x8xf32>
    %142 = tpu.concatenate %138, %139, %140, %141 in 0 : vector<8x8xf32>, vector<8x8xf32>, vector<8x8xf32>, vector<8x8xf32> -> vector<32x8xf32>
    %143 = vector.extract_strided_slice %132 {offsets = [0, 64], sizes = [8, 8], strides = [1, 1]} : vector<8x96xf32> to vector<8x8xf32>
    %144 = vector.extract_strided_slice %132 {offsets = [0, 72], sizes = [8, 8], strides = [1, 1]} : vector<8x96xf32> to vector<8x8xf32>
    %145 = vector.extract_strided_slice %132 {offsets = [0, 80], sizes = [8, 8], strides = [1, 1]} : vector<8x96xf32> to vector<8x8xf32>
    %146 = vector.extract_strided_slice %132 {offsets = [0, 88], sizes = [8, 8], strides = [1, 1]} : vector<8x96xf32> to vector<8x8xf32>
    %147 = tpu.concatenate %143, %144, %145, %146 in 0 : vector<8x8xf32>, vector<8x8xf32>, vector<8x8xf32>, vector<8x8xf32> -> vector<32x8xf32>
    %cst_36 = arith.constant dense<0.000000e+00> : vector<32x32xf32>
    %148 = tpu.matmul %137, %142, %cst_36 {dimension_numbers = #tpu.dot_dimension_numbers<[1], [1], [0], [0], [0, 0, 1, 0], [], []>} : vector<32x8xf32>, vector<32x8xf32>, vector<32x32xf32> -> vector<32x32xf32>
    %149 = arith.addf %148, %26 : vector<32x32xf32>
    %cst_37 = arith.constant dense<0xFF800000> : vector<32xf32>
    %150 = vector.multi_reduction <maximumf>, %149, %cst_37 [1] : vector<32x32xf32> to vector<32xf32>
    %151 = vector.shape_cast %150 : vector<32xf32> to vector<32x1xf32>
    %152 = vector.broadcast %151 : vector<32x1xf32> to vector<32x32xf32>
    %153 = arith.subf %149, %152 : vector<32x32xf32>
    %154 = math.exp %153 : vector<32x32xf32>
    %cst_38 = arith.constant dense<0.000000e+00> : vector<32xf32>
    %155 = vector.multi_reduction <add>, %154, %cst_38 [1] : vector<32x32xf32> to vector<32xf32>
    %156 = vector.shape_cast %155 : vector<32xf32> to vector<32x1xf32>
    %157 = tpu.reciprocal %156 {approx = true} : vector<32x1xf32> -> vector<32x1xf32>
    %158 = vector.broadcast %157 : vector<32x1xf32> to vector<32x32xf32>
    %159 = arith.mulf %154, %158 : vector<32x32xf32>
    %cst_39 = arith.constant dense<0.000000e+00> : vector<32x8xf32>
    %160 = tpu.matmul %159, %147, %cst_39 {dimension_numbers = #tpu.dot_dimension_numbers<[1], [0], [0], [1], [0, 0, 1, 1], [], []>} : vector<32x32xf32>, vector<32x8xf32>, vector<32x8xf32> -> vector<32x8xf32>
    %161 = vector.extract_strided_slice %160 {offsets = [0, 0], sizes = [8, 8], strides = [1, 1]} : vector<32x8xf32> to vector<8x8xf32>
    %162 = vector.extract_strided_slice %160 {offsets = [8, 0], sizes = [8, 8], strides = [1, 1]} : vector<32x8xf32> to vector<8x8xf32>
    %163 = vector.extract_strided_slice %160 {offsets = [16, 0], sizes = [8, 8], strides = [1, 1]} : vector<32x8xf32> to vector<8x8xf32>
    %164 = vector.extract_strided_slice %160 {offsets = [24, 0], sizes = [8, 8], strides = [1, 1]} : vector<32x8xf32> to vector<8x8xf32>
    %165 = tpu.concatenate %161, %162, %163, %164 in 1 : vector<8x8xf32>, vector<8x8xf32>, vector<8x8xf32>, vector<8x8xf32> -> vector<8x32xf32>
    %c232 = arith.constant 232 : index
    %c0_40 = arith.constant 0 : index
    %166 = vector.load %arg1[%c232, %c0_40] : memref<416x96xf32, #tpu.memory_space<vmem>>, vector<32x32xf32>
    %cst_41 = arith.constant dense<0.000000e+00> : vector<8x32xf32>
    %167 = tpu.matmul %165, %166, %cst_41 {dimension_numbers = #tpu.dot_dimension_numbers<[1], [0], [0], [1], [0, 0, 1, 1], [], []>} : vector<8x32xf32>, vector<32x32xf32>, vector<8x32xf32> -> vector<8x32xf32>
    %168 = vector.extract_strided_slice %0 {offsets = [10, 0], sizes = [1, 32], strides = [1, 1]} : vector<24x96xf32> to vector<1x32xf32>
    %169 = vector.broadcast %168 : vector<1x32xf32> to vector<8x32xf32>
    %170 = arith.addf %167, %169 : vector<8x32xf32>
    %171 = arith.addf %127, %170 : vector<8x32xf32>
    %172 = vector.extract_strided_slice %0 {offsets = [11, 0], sizes = [1, 32], strides = [1, 1]} : vector<24x96xf32> to vector<1x32xf32>
    %173 = vector.extract_strided_slice %0 {offsets = [12, 0], sizes = [1, 32], strides = [1, 1]} : vector<24x96xf32> to vector<1x32xf32>
    %cst_42 = arith.constant dense<0.000000e+00> : vector<8xf32>
    %174 = vector.multi_reduction <add>, %171, %cst_42 [1] : vector<8x32xf32> to vector<8xf32>
    %175 = vector.shape_cast %174 : vector<8xf32> to vector<8x1xf32>
    %cst_43 = arith.constant 3.200000e+01 : f32
    %176 = vector.broadcast %cst_43 : f32 to vector<8x1xf32>
    %177 = arith.divf %175, %176 : vector<8x1xf32>
    %178 = vector.broadcast %177 : vector<8x1xf32> to vector<8x32xf32>
    %179 = arith.subf %171, %178 : vector<8x32xf32>
    %180 = arith.mulf %179, %179 : vector<8x32xf32>
    %cst_44 = arith.constant dense<0.000000e+00> : vector<8xf32>
    %181 = vector.multi_reduction <add>, %180, %cst_44 [1] : vector<8x32xf32> to vector<8xf32>
    %182 = vector.shape_cast %181 : vector<8xf32> to vector<8x1xf32>
    %cst_45 = arith.constant 3.200000e+01 : f32
    %183 = vector.broadcast %cst_45 : f32 to vector<8x1xf32>
    %184 = arith.divf %182, %183 : vector<8x1xf32>
    %cst_46 = arith.constant 9.99999974E-6 : f32
    %185 = vector.broadcast %cst_46 : f32 to vector<8x1xf32>
    %186 = arith.addf %184, %185 : vector<8x1xf32>
    %187 = math.rsqrt %186 : vector<8x1xf32>
    %188 = vector.broadcast %187 : vector<8x1xf32> to vector<8x32xf32>
    %189 = arith.mulf %179, %188 : vector<8x32xf32>
    %190 = vector.broadcast %172 : vector<1x32xf32> to vector<8x32xf32>
    %191 = arith.mulf %189, %190 : vector<8x32xf32>
    %192 = vector.broadcast %173 : vector<1x32xf32> to vector<8x32xf32>
    %193 = arith.addf %191, %192 : vector<8x32xf32>
    %c264 = arith.constant 264 : index
    %c0_47 = arith.constant 0 : index
    %194 = vector.load %arg1[%c264, %c0_47] : memref<416x96xf32, #tpu.memory_space<vmem>>, vector<32x64xf32>
    %cst_48 = arith.constant dense<0.000000e+00> : vector<8x64xf32>
    %195 = tpu.matmul %193, %194, %cst_48 {dimension_numbers = #tpu.dot_dimension_numbers<[1], [0], [0], [1], [0, 0, 1, 1], [], []>} : vector<8x32xf32>, vector<32x64xf32>, vector<8x64xf32> -> vector<8x64xf32>
    %196 = vector.extract_strided_slice %0 {offsets = [15, 0], sizes = [1, 64], strides = [1, 1]} : vector<24x96xf32> to vector<1x64xf32>
    %197 = vector.broadcast %196 : vector<1x64xf32> to vector<8x64xf32>
    %198 = arith.addf %195, %197 : vector<8x64xf32>
    %cst_49 = arith.constant 0.000000e+00 : f32
    %199 = vector.broadcast %cst_49 : f32 to vector<8x64xf32>
    %200 = arith.maximumf %198, %199 : vector<8x64xf32>
    %c296 = arith.constant 296 : index
    %c0_50 = arith.constant 0 : index
    %201 = vector.load %arg1[%c296, %c0_50] : memref<416x96xf32, #tpu.memory_space<vmem>>, vector<64x32xf32>
    %cst_51 = arith.constant dense<0.000000e+00> : vector<8x32xf32>
    %202 = tpu.matmul %200, %201, %cst_51 {dimension_numbers = #tpu.dot_dimension_numbers<[1], [0], [0], [1], [0, 0, 1, 1], [], []>} : vector<8x64xf32>, vector<64x32xf32>, vector<8x32xf32> -> vector<8x32xf32>
    %203 = vector.extract_strided_slice %0 {offsets = [16, 0], sizes = [1, 32], strides = [1, 1]} : vector<24x96xf32> to vector<1x32xf32>
    %204 = vector.broadcast %203 : vector<1x32xf32> to vector<8x32xf32>
    %205 = arith.addf %202, %204 : vector<8x32xf32>
    %206 = arith.addf %193, %205 : vector<8x32xf32>
    %207 = vector.extract_strided_slice %0 {offsets = [13, 0], sizes = [1, 32], strides = [1, 1]} : vector<24x96xf32> to vector<1x32xf32>
    %208 = vector.extract_strided_slice %0 {offsets = [14, 0], sizes = [1, 32], strides = [1, 1]} : vector<24x96xf32> to vector<1x32xf32>
    %cst_52 = arith.constant dense<0.000000e+00> : vector<8xf32>
    %209 = vector.multi_reduction <add>, %206, %cst_52 [1] : vector<8x32xf32> to vector<8xf32>
    %210 = vector.shape_cast %209 : vector<8xf32> to vector<8x1xf32>
    %cst_53 = arith.constant 3.200000e+01 : f32
    %211 = vector.broadcast %cst_53 : f32 to vector<8x1xf32>
    %212 = arith.divf %210, %211 : vector<8x1xf32>
    %213 = vector.broadcast %212 : vector<8x1xf32> to vector<8x32xf32>
    %214 = arith.subf %206, %213 : vector<8x32xf32>
    %215 = arith.mulf %214, %214 : vector<8x32xf32>
    %cst_54 = arith.constant dense<0.000000e+00> : vector<8xf32>
    %216 = vector.multi_reduction <add>, %215, %cst_54 [1] : vector<8x32xf32> to vector<8xf32>
    %217 = vector.shape_cast %216 : vector<8xf32> to vector<8x1xf32>
    %cst_55 = arith.constant 3.200000e+01 : f32
    %218 = vector.broadcast %cst_55 : f32 to vector<8x1xf32>
    %219 = arith.divf %217, %218 : vector<8x1xf32>
    %cst_56 = arith.constant 9.99999974E-6 : f32
    %220 = vector.broadcast %cst_56 : f32 to vector<8x1xf32>
    %221 = arith.addf %219, %220 : vector<8x1xf32>
    %222 = math.rsqrt %221 : vector<8x1xf32>
    %223 = vector.broadcast %222 : vector<8x1xf32> to vector<8x32xf32>
    %224 = arith.mulf %214, %223 : vector<8x32xf32>
    %225 = vector.broadcast %207 : vector<1x32xf32> to vector<8x32xf32>
    %226 = arith.mulf %224, %225 : vector<8x32xf32>
    %227 = vector.broadcast %208 : vector<1x32xf32> to vector<8x32xf32>
    %228 = arith.addf %226, %227 : vector<8x32xf32>
    %229 = vector.extract_strided_slice %0 {offsets = [17, 0], sizes = [1, 32], strides = [1, 1]} : vector<24x96xf32> to vector<1x32xf32>
    %230 = vector.extract_strided_slice %0 {offsets = [18, 0], sizes = [1, 32], strides = [1, 1]} : vector<24x96xf32> to vector<1x32xf32>
    %cst_57 = arith.constant dense<0.000000e+00> : vector<8xf32>
    %231 = vector.multi_reduction <add>, %228, %cst_57 [1] : vector<8x32xf32> to vector<8xf32>
    %232 = vector.shape_cast %231 : vector<8xf32> to vector<8x1xf32>
    %cst_58 = arith.constant 3.200000e+01 : f32
    %233 = vector.broadcast %cst_58 : f32 to vector<8x1xf32>
    %234 = arith.divf %232, %233 : vector<8x1xf32>
    %235 = vector.broadcast %234 : vector<8x1xf32> to vector<8x32xf32>
    %236 = arith.subf %228, %235 : vector<8x32xf32>
    %237 = arith.mulf %236, %236 : vector<8x32xf32>
    %cst_59 = arith.constant dense<0.000000e+00> : vector<8xf32>
    %238 = vector.multi_reduction <add>, %237, %cst_59 [1] : vector<8x32xf32> to vector<8xf32>
    %239 = vector.shape_cast %238 : vector<8xf32> to vector<8x1xf32>
    %cst_60 = arith.constant 3.200000e+01 : f32
    %240 = vector.broadcast %cst_60 : f32 to vector<8x1xf32>
    %241 = arith.divf %239, %240 : vector<8x1xf32>
    %cst_61 = arith.constant 9.99999974E-6 : f32
    %242 = vector.broadcast %cst_61 : f32 to vector<8x1xf32>
    %243 = arith.addf %241, %242 : vector<8x1xf32>
    %244 = math.rsqrt %243 : vector<8x1xf32>
    %245 = vector.broadcast %244 : vector<8x1xf32> to vector<8x32xf32>
    %246 = arith.mulf %236, %245 : vector<8x32xf32>
    %247 = vector.broadcast %229 : vector<1x32xf32> to vector<8x32xf32>
    %248 = arith.mulf %246, %247 : vector<8x32xf32>
    %249 = vector.broadcast %230 : vector<1x32xf32> to vector<8x32xf32>
    %250 = arith.addf %248, %249 : vector<8x32xf32>
    %c360 = arith.constant 360 : index
    %c0_62 = arith.constant 0 : index
    %251 = vector.load %arg1[%c360, %c0_62] : memref<416x96xf32, #tpu.memory_space<vmem>>, vector<32x8xf32>
    %cst_63 = arith.constant dense<0.000000e+00> : vector<8x8xf32>
    %252 = tpu.matmul %250, %251, %cst_63 {dimension_numbers = #tpu.dot_dimension_numbers<[1], [0], [0], [1], [0, 0, 1, 1], [], []>} : vector<8x32xf32>, vector<32x8xf32>, vector<8x8xf32> -> vector<8x8xf32>
    %253 = vector.extract_strided_slice %0 {offsets = [19, 0], sizes = [1, 8], strides = [1, 1]} : vector<24x96xf32> to vector<1x8xf32>
    %254 = vector.broadcast %253 : vector<1x8xf32> to vector<8x8xf32>
    %255 = arith.addf %252, %254 : vector<8x8xf32>
    %256 = vector.broadcast %15 : vector<8x1xf32> to vector<8x8xf32>
    %257 = arith.mulf %255, %256 : vector<8x8xf32>
    %258 = vector.broadcast %5 : vector<8x1xf32> to vector<8x8xf32>
    %259 = arith.addf %257, %258 : vector<8x8xf32>
    %c0_64 = arith.constant 0 : index
    %c0_65 = arith.constant 0 : index
    %260 = vector.load %arg2[%c0_64, %c0_65] : memref<8x8xf32, #tpu.memory_space<vmem>>, vector<8x8xf32>
    tpu.vector_store %arg2[%c0_64, %c0_65], %259 {strides = array<i32>} : memref<8x8xf32, #tpu.memory_space<vmem>>, vector<8x8xf32>,
    return
  }
}

</mosaic_0001>

<bundles_post_ra>
// kernel: itrans_forward.1
= control target key start
LH: loop header
LB: loop body
LE: loop exit
PB: predicated region body
PF: predicated region fallthrough
CT: control target
= control target key end

     0   :  { %vm16_vm0 = vcmask 64512   ;;  %s2548_s0 = inlined_call_operand.vmem [shape: f32[8,8], index: 0, kind: input, shape index: {}]   ;;  %s2549_s1 = inlined_call_operand.vmem [shape: f32[416,96], index: 1, kind: input, shape index: {}]   ;;  %s2550_s2 = inlined_call_operand.hbm [shape: f32[8,8], index: 2, kind: output, shape index: {}]  }
   0x1   :  { %v15_v0 = vld [vmem:[%s2548_s0] sm:$0xff] }
   0x2   :  { %7 = vsyncpa [#allocation3], 0  ;;  %v17_v1 = vsel %vm16_vm0, %v15_v0, 0.0  ;;  %v38_v7 = vld [vmem:[%s2549_s1] sm:$0xff]  ;;  %v2091_v8 = vmov 0.0   ;;  %vm2092_vm1 = vmmov 0   ;;  %v39_v25 = vlaneseq }
   0x3   :  { %18 = vadd.xlane.f32.xlu0 %v17_v1  ;;  %1689 = vmatprep.subr.mxu0 %v2091_v8  ;;  %v120_v9 = vld [vmem:[%s2549_s1 + $0x28] sm:$0xff]  ;;  %v121_v10 = vld [vmem:[%s2549_s1 + $0x30] sm:$0xff]  ;;  %v2093_v11 = vmov 0.0|0.0   ;;  %v122_v22 = vld [vmem:[%s2549_s1 + $0x38] sm:$0xff]  ;;  %vm128_vm4 = vcmask 261120   ;;  %s2094_s22 = smov 104  }
   0x4   :  { %1691 = vmatprep.mubr.msk.f32.mxu0 %vm2092_vm1, %v2091_v8  ;;  %1690 = vmatpush3.msra.mxu0 %v38_v7  ;;  %v1866_v12 = vpack.c.bf16 %v121_v10, %v120_v9  ;;  %v123_v23 = vld [vmem:[%s2549_s1 + $0x40] sm:$0xff]  ;;  %v2151_v26 = vshrl.u32 %v39_v25, 7  ;;  %v2159_v28 = vld [vmem:[%s2549_s1 + $0x188] sm:$0xff]  ;;  %s2095_s23 = smov 120   ;;  %s2096_s24 = smov 112   ;;  %vm2186_vm5 = vmpackc.low %vm16_vm0, %vm16_vm0  ;;  %vm484_vm6 = vcmask 130048  }
   0x5   :  { %1702 = vmatprep.mubr.msk.f32.mxu1 %vm2092_vm1, %v2091_v8  ;;  %1865 = vmatprep.subr.bf16.mxu1 %v2093_v11  ;;  %v1869_v24 = vpack.c.bf16 %v123_v23, %v122_v22  ;;  %s2097_s25 = smov 96   ;;  %v2207_v52 = vld [vmem:[%s2549_s1 + $0x10] sm:$0xff]  ;;  %v2212_v53 = vld [vmem:[%s2549_s1 + $0x8] sm:$0xff]  ;;  %v2220_v59 = vld [vmem:[%s2549_s1 + $0x18] sm:$0xff]  ;;  %s2098_s6 = smov 64   ;;  %vm486_vm7 = vcmask 195584  }
   0x6   :  { %1867 = vmatpush3.bf16.msra.mxu1 %v1866_v12  ;;  %v2154_v27 = vsub.s32 0, %v2151_v26  ;;  %v2168_v33 = vsub.s32 1, %v2151_v26  ;;  %v2226_v62 = vld [vmem:[%s2549_s1 + $0x20] sm:$0xff]  ;;  %s2099_s14 = smov 8   ;;  %s2100_s15 = smov 24   ;;  %vm688_vm8 = vcmask 523264  }
   0x7   :  { %1868 = vmatprep.subr.bf16.mxu1 %v2093_v11  ;;  %s2101_s16 = smov 16  }
   0x8   :  { %v42_v29 = vrot.slane %v2159_v28, %v2154_v27  ;;  %v127_v34 = vrot.slane %v2159_v28, %v2168_v33 }
   0xa   :  { %1870 = vmatpush3.bf16.msra.mxu1 %v1869_v24 }
  0x90   :  { %v19_v2 = vpop.xlane.xlu0 %18 }
  0x91   :  { %v2122_v3 = vmul.f32 0.125, %v19_v2 }
  0x93   :  { %v22_v4 = vsub.f32 %v15_v0, %v2122_v3 }
  0x95   :  { %v23_v5 = vmul.f32 %v22_v4, %v22_v4 }
  0x97   :  { %v24_v6 = vsel %vm16_vm0, %v23_v5, 0.0 }
  0x98   :  { %25 = vadd.xlane.f32.xlu0 %v24_v6 }
 0x125   :  { %v26_v13 = vpop.xlane.xlu0 %25 }
 0x126   :  { %v27_v14 = vmul.f32 0.125, %v26_v13 }
 0x128   :  { %v28_v15 = vadd.f32 1e-05, %v27_v14 }
 0x12a   :  { %2023 = vrsqrt.f32 %v28_v15  ;;  %vm31_vm2 = vcmp.eq.f32.partialorder %v28_v15, inf  ;;  %v34_v19 = vand.u32 2147483648, %v28_v15  ;;  %vm33_vm3 = vcmp.eq.f32.partialorder %v28_v15, 0.0 }
 0x134   :  { %v2024_v16 = vpop.eup %2023 }
 0x135   :  { %v37_v17 = vmul.f32 %v2024_v16, %v22_v4  ;;  %v30_v18 = vmul.f32 %v2024_v16, %v28_v15 }
 0x137   :  { %1692 = vmatmul.mubr.msk.f32.vlgmr.msra.gmra.mrb[0].mxu0 %vm16_vm0, %v37_v17  ;;  %v32_v20 = vsel %vm31_vm2, %v28_v15, %v30_v18 }
 0x138   :  { %v2143_v21 = vsel %vm33_vm3, %v34_v19, %v32_v20 }
 0x20a   :  { %v112_v30 = vpop.f32.mrb[0].mxu0 }
 0x20b   :  { %v2163_v31 = vadd.f32 %v112_v30, %v42_v29  ;;  %v1693_v32 = vpop.f32.mrb[1].mxu0 }
 0x20d   :  { %1703 = vmatmul.mubr.msk.f32.vlgmr.msra.gmra.mrb[0].mxu1 %vm128_vm4, %v2163_v31 }
 0x2e0   :  { %v198_v35 = vpop.f32.mrb[0].mxu1 }
 0x2e1   :  { %v199_v36 = vadd.f32 %v198_v35, %v127_v34  ;;  %v1704_v37 = vpop.f32.mrb[1].mxu1 }
 0x2e3   :  { %207 = vrot.lane.b32.xlu0 %v199_v36, %s2094_s22  ;;  %203 = vrot.lane.b32.xlu1 %v199_v36, %s2095_s23 }
 0x2e4   :  { %1713 = vmatprep.mubr.msk.f32.mxu0 %vm16_vm0, %v199_v36 }
 0x2e7   :  { %205 = vrot.lane.b32.xlu1 %v199_v36, %s2096_s24 }
 0x355   :  { %v204_v38 = vpop.permute.xlu1 %203  ;;  %v208_v40 = vpop.permute.xlu0 %207 }
 0x356   :  { %v2176_v39 = vpack.i.bf16 %v204_v38, %v199_v36 }
 0x358   :  { %1984 = vrot.lane.b32.xlu1 %v2176_v39, %s2097_s25 }
 0x359   :  { %v206_v41 = vpop.permute.xlu1 %205 }
 0x35a   :  { %v2180_v42 = vpack.i.bf16 %v208_v40, %v206_v41 }
 0x35c   :  { %1989 = vrot.lane.b32.xlu1 %v2180_v42, %s2097_s25 }
 0x3ca   :  { %v1985_v43 = vpop.permute.xlu1 %1984 }
 0x3cb   :  { %v1987_v44 = vunpack.i.h.bf16 %v1985_v43  ;;  %v1986_v45 = vunpack.i.l.bf16 %v1985_v43 }
 0x3cd   :  { %v1871_v47 = vpack.c.bf16 %v1987_v44, %v1986_v45 }
 0x3ce   :  { %v1990_v48 = vpop.permute.xlu1 %1989 }
 0x3cf   :  { %v1992_v49 = vunpack.i.h.bf16 %v1990_v48  ;;  %v1991_v50 = vunpack.i.l.bf16 %v1990_v48  ;;  %1873 = vmatprep.subr.msk.bf16.mxu0 %vm2186_vm5, %v1871_v47 }
 0x3d0   :  { %1876 = vmatpush3.bf16.xpose.msk.msra.mxu0 %vm2186_vm5, %v1871_v47 }
 0x3d1   :  { %v1877_v51 = vpack.c.bf16 %v1992_v49, %v1991_v50 }
 0x3d3   :  { %1879 = vmatprep.subr.msk.bf16.mxu0 %vm2186_vm5, %v1877_v51 }
 0x3d8   :  { %1882 = vmatpush3.bf16.xpose.msk.msra.mxu0 %vm2186_vm5, %v1877_v51 }
 0x3d9   :  { %1897 = vmatprep.subr.bf16.mxu0 %v2093_v11 }
 0x3df   :  { %1714 = vmatmul.mubr.msk.f32.vlgmr.msra.gmra.mrb[2].mxu0 %vm16_vm0, %v204_v38 }
 0x3e0   :  { %1716 = vmatprep.mubr.msk.f32.mxu0 %vm16_vm0, %v206_v41 }
 0x3e3   :  { %1717 = vmatmul.mubr.msk.f32.gmra.mrb[4].mxu0 %vm16_vm0, %v208_v40 }
 0x3e4   :  { %1752 = vmatprep.mubr.msk.f32.mxu0 %vm2092_vm1, %v2091_v8 }
 0x4b2   :  { %v1715_v54 = vpop.f32.mrb[2].mxu0 }
 0x4b3   :  { %v305_v55 = vadd.f32 %v1715_v54, %v2207_v52  ;;  %v299_v56 = vpop.f32.mrb[3].mxu0 }
 0x4b4   :  { %v300_v57 = vadd.f32 %v299_v56, %v2212_v53  ;;  %v488_v56 = vld [vmem:[%s2549_s1 + $0x48] sm:$0xff] }
 0x4b5   :  { %v321_v58 = vsel %vm128_vm4, %v305_v55, -inf }
 0x4b6   :  { %322 = vmax.xlane.f32.xlu0 %v321_v58  ;;  %v1718_v60 = vpop.f32.mrb[4].mxu0  ;;  %v318_v61 = vsel %vm128_vm4, %v300_v57, -inf }
 0x4b7   :  { %v309_v63 = vpop.f32.mrb[5].mxu0  ;;  %319 = vmax.xlane.f32.xlu1 %v318_v61  ;;  %v315_v1 = vadd.f32 %v1718_v60, %v2226_v62  ;;  %v490_v60 = vld [vmem:[%s2549_s1 + $0x58] sm:$0xff]  ;;  %v491_v61 = vld [vmem:[%s2549_s1 + $0x60] sm:$0xff] }
 0x4b8   :  { %v310_v0 = vadd.f32 %v309_v63, %v2220_v59  ;;  %v1895_v63 = vpack.c.bf16 %v491_v61, %v490_v60  ;;  %v682_v60 = vld [vmem:[%s2549_s1 + $0xb8] sm:$0xff]  ;;  %v683_v61 = vld [vmem:[%s2549_s1 + $0xc0] sm:$0xff] }
 0x4b9   :  { %v327_v4 = vsel %vm128_vm4, %v315_v1, -inf }
 0x4ba   :  { %v324_v2 = vsel %vm128_vm4, %v310_v0, -inf }
 0x4bb   :  { %325 = vmax.xlane.f32.xlu1 %v324_v2 }
 0x4bf   :  { %328 = vmax.xlane.f32.xlu1 %v327_v4 }
 0x543   :  { %v323_v5 = vpop.xlane.xlu0 %322 }
 0x544   :  { %v331_v6 = vsub.f32 %v305_v55, %v323_v5  ;;  %v320_v7 = vpop.xlane.xlu1 %319 }
 0x545   :  { %v330_v9 = vsub.f32 %v300_v57, %v320_v7  ;;  %v489_v57 = vld [vmem:[%s2549_s1 + $0x50] sm:$0xff] }
 0x546   :  { %v336_v10 = vmul.f32 1.442695, %v331_v6  ;;  %v1892_v58 = vpack.c.bf16 %v489_v57, %v488_v56 }
 0x547   :  { %v334_v12 = vmul.f32 1.442695, %v330_v9 }
 0x548   :  { %2025 = vpow2.f32 %v336_v10  ;;  %v326_v13 = vpop.xlane.xlu1 %325 }
 0x549   :  { %2027 = vpow2.f32 %v334_v12  ;;  %v332_v14 = vsub.f32 %v310_v0, %v326_v13  ;;  %v2271_v13 = vsub.s32 2, %v2151_v26 }
 0x54b   :  { %v338_v15 = vmul.f32 1.442695, %v332_v14  ;;  %v495_v14 = vrot.slane %v2159_v28, %v2271_v13 }
 0x54c   :  { %v329_v16 = vpop.xlane.xlu1 %328 }
 0x54d   :  { %2029 = vpow2.f32 %v338_v15  ;;  %v333_v17 = vsub.f32 %v315_v1, %v329_v16 }
 0x54f   :  { %v340_v18 = vmul.f32 1.442695, %v333_v17 }
 0x551   :  { %2031 = vpow2.f32 %v340_v18 }
 0x552   :  { %v2026_v19 = vpop.eup %2025 }
 0x553   :  { %v2028_v20 = vpop.eup %2027  ;;  %v345_v22 = vsel %vm128_vm4, %v2026_v19, 0.0 }
 0x554   :  { %346 = vadd.xlane.f32.xlu0 %v345_v22  ;;  %v342_v23 = vsel %vm128_vm4, %v2028_v20, 0.0 }
 0x555   :  { %343 = vadd.xlane.f32.xlu1 %v342_v23 }
 0x557   :  { %v2030_v24 = vpop.eup %2029 }
 0x558   :  { %v348_v25 = vsel %vm128_vm4, %v2030_v24, 0.0 }
 0x559   :  { %349 = vadd.xlane.f32.xlu1 %v348_v25 }
 0x55b   :  { %v2032_v29 = vpop.eup %2031 }
 0x55c   :  { %v351_v30 = vsel %vm128_vm4, %v2032_v29, 0.0 }
 0x55d   :  { %352 = vadd.xlane.f32.xlu0 %v351_v30  ;;  %v595_v30 = vld [vmem:[%s2549_s1 + $0x70] sm:$0xff] }
 0x56a   :  { %1994 = vrot.lane.b32.xlu1 %v2176_v39, %s2098_s6 }
 0x573   :  { %1999 = vrot.lane.b32.xlu0 %v2180_v42, %s2098_s6 }
 0x5e1   :  { %v347_v34 = vpop.xlane.xlu0 %346 }
 0x5e2   :  { %v344_v32 = vpop.xlane.xlu1 %343 }
 0x5e3   :  { %2033 = vrcp.f32 %v344_v32 }
 0x5e4   :  { %2035 = vrcp.f32 %v347_v34  ;;  %v597_v34 = vld [vmem:[%s2549_s1 + $0x80] sm:$0xff] }
 0x5e6   :  { %v350_v35 = vpop.xlane.xlu1 %349 }
 0x5e7   :  { %2037 = vrcp.f32 %v350_v35 }
 0x5ea   :  { %v353_v36 = vpop.xlane.xlu0 %352  ;;  %v1995_v37 = vpop.permute.xlu1 %1994 }
 0x5eb   :  { %v1997_v38 = vunpack.i.h.bf16 %v1995_v37  ;;  %v1996_v40 = vunpack.i.l.bf16 %v1995_v37  ;;  %2039 = vrcp.f32 %v353_v36  ;;  %v676_v36 = vld [vmem:[%s2549_s1 + $0x88] sm:$0xff]  ;;  %v677_v37 = vld [vmem:[%s2549_s1 + $0x90] sm:$0xff] }
 0x5ed   :  { %v2034_v41 = vpop.eup %2033  ;;  %v1883_v43 = vpack.c.bf16 %v1997_v38, %v1996_v40  ;;  %v678_v38 = vld [vmem:[%s2549_s1 + $0x98] sm:$0xff]  ;;  %v1904_v40 = vpack.c.bf16 %v677_v37, %v676_v36  ;;  %v778_v36 = vsub.s32 5, %v2151_v26  ;;  %v783_v37 = vsub.s32 6, %v2151_v26 }
 0x5ee   :  { %v2000_v44 = vpop.permute.xlu0 %1999  ;;  %v358_v45 = vmul.f32 %v2034_v41, %v2028_v20  ;;  %v2036_v48 = vpop.eup %2035  ;;  %v679_v41 = vld [vmem:[%s2549_s1 + $0xa0] sm:$0xff] }
 0x5ef   :  { %v2002_v47 = vunpack.i.h.bf16 %v2000_v44  ;;  %v2001_v39 = vunpack.i.l.bf16 %v2000_v44  ;;  %1884 = vmatprep.subr.bf16.mxu1 %v1883_v43  ;;  %v359_v50 = vmul.f32 %v2036_v48, %v2026_v19  ;;  %v680_v44 = vld [vmem:[%s2549_s1 + $0xa8] sm:$0xff] }
 0x5f0   :  { %1886 = vmatpush3.bf16.msra.mxu1 %v1883_v43  ;;  %1727 = vmatprep.mubr.msk.f32.mxu1 %vm128_vm4, %v358_v45  ;;  %v1907_v43 = vpack.c.bf16 %v679_v41, %v678_v38  ;;  %v681_v45 = vld [vmem:[%s2549_s1 + $0xb0] sm:$0xff]  ;;  %v779_v38 = vrot.slane %v2159_v28, %v778_v36 }
 0x5f1   :  { %v1887_v42 = vpack.c.bf16 %v2002_v47, %v2001_v39  ;;  %v2038_v49 = vpop.eup %2037  ;;  %v1910_v47 = vpack.c.bf16 %v681_v45, %v680_v44 }
 0x5f2   :  { %v360_v54 = vmul.f32 %v2038_v49, %v2030_v24  ;;  %v2314_v49 = vsub.s32 3, %v2151_v26 }
 0x5f3   :  { %1888 = vmatprep.subr.bf16.mxu1 %v1887_v42 }
 0x5f4   :  { %1890 = vmatpush3.bf16.msra.mxu1 %v1887_v42 }
 0x5f5   :  { %1891 = vmatprep.subr.bf16.mxu1 %v2093_v11  ;;  %v2040_v51 = vpop.eup %2039 }
 0x5f6   :  { %v361_v55 = vmul.f32 %v2040_v51, %v2032_v29  ;;  %v594_v29 = vld [vmem:[%s2549_s1 + $0x68] sm:$0xff]  ;;  %v587_v51 = vrot.slane %v2159_v28, %v2314_v49 }
 0x5f7   :  { %1728 = vmatmul.mubr.msk.f32.vlgmr.msra.gmra.mrb[2].mxu1 %vm128_vm4, %v359_v50  ;;  %v1898_v32 = vpack.c.bf16 %v595_v30, %v594_v29  ;;  %v591_v50 = vsub.s32 4, %v2151_v26  ;;  %v788_v29 = vld [vmem:[%s2549_s1 + $0xd8] sm:$0xff]  ;;  %v789_v30 = vld [vmem:[%s2549_s1 + $0xe0] sm:$0xff] }
 0x5f8   :  { %1730 = vmatprep.mubr.msk.f32.mxu1 %vm128_vm4, %v360_v54  ;;  %1893 = vmatpush3.bf16.msra.mxu1 %v1892_v58 }
 0x5f9   :  { %1894 = vmatprep.subr.bf16.mxu1 %v2093_v11  ;;  %1899 = vmatpush3.bf16.msra.mxu0 %v1898_v32  ;;  %v1919_v32 = vpack.c.bf16 %v789_v30, %v788_v29 }
 0x5fa   :  { %1900 = vmatprep.subr.bf16.mxu0 %v2093_v11 }
 0x5fb   :  { %1731 = vmatmul.mubr.msk.f32.gmra.mrb[4].mxu1 %vm128_vm4, %v361_v55  ;;  %v592_v55 = vrot.slane %v2159_v28, %v591_v50 }
 0x5fc   :  { %1741 = vmatprep.mubr.msk.f32.mxu1 %vm2092_vm1, %v2091_v8  ;;  %1896 = vmatpush3.bf16.msra.mxu1 %v1895_v63  ;;  %v1913_v63 = vpack.c.bf16 %v683_v61, %v682_v60 }
 0x5fd   :  { %1903 = vmatprep.subr.bf16.mxu1 %v2093_v11 }
 0x6ca   :  { %v1729_v0 = vpop.f32.mrb[2].mxu1 }
 0x6cb   :  { %472 = vrot.lane.b32.xlu1 %v1729_v0, %s2099_s14  ;;  %v452_v1 = vpop.f32.mrb[3].mxu1  ;;  %v600_v0 = vsub.s32 7, %v2151_v26  ;;  %v1471_v26 = vld [vmem:[%s2549_s1 + $0x170] sm:$0xff] }
 0x6ce   :  { %v1732_v2 = vpop.f32.mrb[4].mxu1 }
 0x6cf   :  { %480 = vrot.lane.b32.xlu0 %v1732_v2, %s2100_s15  ;;  %v462_v4 = vpop.f32.mrb[5].mxu1 }
 0x6d0   :  { %476 = vrot.lane.b32.xlu1 %v462_v4, %s2101_s16 }
 0x73d   :  { %v473_v5 = vpop.permute.xlu1 %472 }
 0x73e   :  { %v483_v6 = vsel %vm16_vm0, %v452_v1, %v473_v5  ;;  %v601_v1 = vrot.slane %v2159_v28, %v600_v0 }
 0x741   :  { %v481_v9 = vpop.permute.xlu0 %480 }
 0x742   :  { %v477_v7 = vpop.permute.xlu1 %476 }
 0x743   :  { %v485_v10 = vsel %vm484_vm6, %v483_v6, %v477_v7  ;;  %v2339_v7 = vld [vmem:[%s2549_s1 + $0x190] sm:$0xff] }
 0x744   :  { %v487_v12 = vsel %vm486_vm7, %v485_v10, %v481_v9  ;;  %v687_v9 = vrot.slane %v2339_v7, %v2154_v27 }
 0x745   :  { %1742 = vmatmul.mubr.msk.f32.vlgmr.msra.gmra.mrb[6].mxu1 %vm128_vm4, %v487_v12 }
 0x746   :  { %1771 = vmatprep.mubr.msk.f32.mxu1 %vm2092_vm1, %v2091_v8  ;;  %1905 = vmatpush3.bf16.msra.mxu1 %v1904_v40 }
 0x747   :  { %1906 = vmatprep.subr.bf16.mxu1 %v2093_v11 }
 0x74a   :  { %1908 = vmatpush3.bf16.msra.mxu1 %v1907_v43  ;;  %v784_v43 = vrot.slane %v2159_v28, %v783_v37 }
 0x74b   :  { %1909 = vmatprep.subr.bf16.mxu1 %v2093_v11 }
 0x74e   :  { %1911 = vmatpush3.bf16.msra.mxu1 %v1910_v47  ;;  %v793_v47 = vrot.slane %v2339_v7, %v2168_v33 }
 0x74f   :  { %1912 = vmatprep.subr.bf16.mxu1 %v2093_v11 }
 0x752   :  { %1914 = vmatpush3.bf16.msra.mxu1 %v1913_v63 }
 0x818   :  { %v565_v15 = vpop.f32.mrb[6].mxu1 }
 0x819   :  { %v566_v16 = vadd.f32 %v565_v15, %v495_v14  ;;  %v1743_v17 = vpop.f32.mrb[7].mxu1 }
 0x81b   :  { %v569_v18 = vadd.f32 %v566_v16, %v2163_v31  ;;  %v596_v31 = vld [vmem:[%s2549_s1 + $0x78] sm:$0xff] }
 0x81c   :  { %v1901_v35 = vpack.c.bf16 %v597_v34, %v596_v31 }
 0x81d   :  { %v570_v19 = vsel %vm128_vm4, %v569_v18, 0.0 }
 0x81e   :  { %571 = vadd.xlane.f32.xlu1 %v570_v19  ;;  %1902 = vmatpush3.bf16.msra.mxu0 %v1901_v35 }
 0x81f   :  { %1915 = vmatprep.subr.bf16.mxu0 %v2093_v11 }
 0x8ab   :  { %v572_v20 = vpop.xlane.xlu1 %571 }
 0x8ac   :  { %v574_v22 = vmul.f32 0.03125, %v572_v20 }
 0x8ae   :  { %v575_v23 = vsub.f32 %v569_v18, %v574_v22 }
 0x8b0   :  { %v576_v24 = vmul.f32 %v575_v23, %v575_v23 }
 0x8b2   :  { %v577_v25 = vsel %vm128_vm4, %v576_v24, 0.0  ;;  %v787_v24 = vld [vmem:[%s2549_s1 + $0xd0] sm:$0xff] }
 0x8b3   :  { %578 = vadd.xlane.f32.xlu0 %v577_v25 }
 0x940   :  { %v579_v39 = vpop.xlane.xlu0 %578 }
 0x941   :  { %v580_v42 = vmul.f32 0.03125, %v579_v39 }
 0x943   :  { %v581_v48 = vadd.f32 1e-05, %v580_v42 }
 0x945   :  { %2041 = vrsqrt.f32 %v581_v48 }
 0x94f   :  { %v2042_v54 = vpop.eup %2041 }
 0x950   :  { %v583_v56 = vmul.f32 %v2042_v54, %v575_v23  ;;  %v786_v23 = vld [vmem:[%s2549_s1 + $0xc8] sm:$0xff] }
 0x951   :  { %v1916_v25 = vpack.c.bf16 %v787_v24, %v786_v23 }
 0x952   :  { %v588_v57 = vmul.f32 %v587_v51, %v583_v56 }
 0x954   :  { %v593_v58 = vadd.f32 %v592_v55, %v588_v57 }
 0x956   :  { %1753 = vmatmul.mubr.msk.f32.vlgmr.msra.gmra.mrb[6].mxu0 %vm128_vm4, %v593_v58 }
 0x957   :  { %1782 = vmatprep.mubr.msk.f32.mxu0 %vm2092_vm1, %v2091_v8  ;;  %1917 = vmatpush3.bf16.msra.mxu0 %v1916_v25 }
 0x958   :  { %1918 = vmatprep.subr.bf16.mxu0 %v2093_v11 }
 0x95b   :  { %1920 = vmatpush3.bf16.msra.mxu0 %v1919_v32 }
 0xa29   :  { %v671_v2 = vpop.f32.mrb[6].mxu0 }
 0xa2a   :  { %v672_v4 = vadd.f32 %v671_v2, %v601_v1  ;;  %v1754_v5 = vpop.f32.mrb[7].mxu0 }
 0xa2c   :  { %v675_v6 = vmax.f32 %v672_v4, 0.0 }
 0xa2e   :  { %1772 = vmatmul.mubr.msk.f32.vlgmr.msra.gmra.mrb[8].mxu1 %vm688_vm8, %v675_v6 }
 0xb01   :  { %v758_v10 = vpop.f32.mrb[8].mxu1 }
 0xb02   :  { %v759_v12 = vadd.f32 %v758_v10, %v687_v9  ;;  %v1773_v14 = vpop.f32.mrb[9].mxu1 }
 0xb04   :  { %v762_v15 = vadd.f32 %v759_v12, %v593_v58 }
 0xb06   :  { %v763_v16 = vsel %vm128_vm4, %v762_v15, 0.0 }
 0xb07   :  { %764 = vadd.xlane.f32.xlu0 %v763_v16 }
 0xb94   :  { %v765_v17 = vpop.xlane.xlu0 %764 }
 0xb95   :  { %v766_v18 = vmul.f32 0.03125, %v765_v17 }
 0xb97   :  { %v767_v19 = vsub.f32 %v762_v15, %v766_v18 }
 0xb99   :  { %v768_v20 = vmul.f32 %v767_v19, %v767_v19 }
 0xb9b   :  { %v769_v22 = vsel %vm128_vm4, %v768_v20, 0.0 }
 0xb9c   :  { %770 = vadd.xlane.f32.xlu1 %v769_v22 }
 0xc29   :  { %v771_v31 = vpop.xlane.xlu1 %770 }
 0xc2a   :  { %v772_v34 = vmul.f32 0.03125, %v771_v31 }
 0xc2c   :  { %v773_v35 = vadd.f32 1e-05, %v772_v34 }
 0xc2e   :  { %2043 = vrsqrt.f32 %v773_v35 }
 0xc38   :  { %v2044_v40 = vpop.eup %2043 }
 0xc39   :  { %v775_v41 = vmul.f32 %v2044_v40, %v767_v19 }
 0xc3b   :  { %v780_v44 = vmul.f32 %v779_v38, %v775_v41 }
 0xc3d   :  { %v2366_v45 = vadd.f32 %v784_v43, %v780_v44 }
 0xc3f   :  { %1783 = vmatmul.mubr.msk.f32.vlgmr.msra.gmra.mrb[8].mxu0 %vm128_vm4, %v2366_v45 }
 0xd12   :  { %v863_v39 = vpop.f32.mrb[8].mxu0 }
 0xd13   :  { %v864_v42 = vadd.f32 %v863_v39, %v793_v47  ;;  %v1784_v48 = vpop.f32.mrb[9].mxu0 }
 0xd15   :  { %870 = vrot.lane.b32.xlu1 %v864_v42, %s2096_s24  ;;  %868 = vrot.lane.b32.xlu0 %v864_v42, %s2095_s23 }
 0xd16   :  { %1793 = vmatprep.mubr.msk.f32.mxu0 %vm16_vm0, %v864_v42 }
 0xd19   :  { %872 = vrot.lane.b32.xlu1 %v864_v42, %s2094_s22 }
 0xd87   :  { %v871_v28 = vpop.permute.xlu1 %870  ;;  %v869_v51 = vpop.permute.xlu0 %868 }
 0xd88   :  { %v2376_v54 = vpack.i.bf16 %v869_v51, %v864_v42 }
 0xd8a   :  { %2004 = vrot.lane.b32.xlu0 %v2376_v54, %s2097_s25 }
 0xd8b   :  { %v873_v55 = vpop.permute.xlu1 %872 }
 0xd8c   :  { %v2380_v56 = vpack.i.bf16 %v873_v55, %v871_v28 }
 0xd8e   :  { %2009 = vrot.lane.b32.xlu1 %v2380_v56, %s2097_s25 }
 0xdfc   :  { %v2005_v57 = vpop.permute.xlu0 %2004 }
 0xdfd   :  { %v2007_v58 = vunpack.i.h.bf16 %v2005_v57  ;;  %v2006_v60 = vunpack.i.l.bf16 %v2005_v57 }
 0xdff   :  { %v1921_v61 = vpack.c.bf16 %v2007_v58, %v2006_v60 }
 0xe00   :  { %v2010_v63 = vpop.permute.xlu1 %2009 }
 0xe01   :  { %v2012_v1 = vunpack.i.h.bf16 %v2010_v63  ;;  %v2011_v2 = vunpack.i.l.bf16 %v2010_v63  ;;  %1923 = vmatprep.subr.msk.bf16.mxu0 %vm2186_vm5, %v1921_v61 }
 0xe02   :  { %1926 = vmatpush3.bf16.xpose.msk.msra.mxu0 %vm2186_vm5, %v1921_v61 }
 0xe03   :  { %v1927_v4 = vpack.c.bf16 %v2012_v1, %v2011_v2 }
 0xe05   :  { %1929 = vmatprep.subr.msk.bf16.mxu0 %vm2186_vm5, %v1927_v4 }
 0xe0a   :  { %1932 = vmatpush3.bf16.xpose.msk.msra.mxu0 %vm2186_vm5, %v1927_v4 }
 0xe0b   :  { %1947 = vmatprep.subr.bf16.mxu0 %v2093_v11 }
 0xe11   :  { %1794 = vmatmul.mubr.msk.f32.vlgmr.msra.gmra.mrb[10].mxu0 %vm16_vm0, %v869_v51 }
 0xe12   :  { %1796 = vmatprep.mubr.msk.f32.mxu0 %vm16_vm0, %v871_v28 }
 0xe15   :  { %1797 = vmatmul.mubr.msk.f32.gmra.mrb[12].mxu0 %vm16_vm0, %v873_v55 }
 0xe16   :  { %1832 = vmatprep.mubr.msk.f32.mxu0 %vm2092_vm1, %v2091_v8 }
 0xee4   :  { %v1795_v5 = vpop.f32.mrb[10].mxu0 }
 0xee5   :  { %v970_v6 = vadd.f32 %v1795_v5, %v2207_v52  ;;  %v964_v9 = vpop.f32.mrb[11].mxu0 }
 0xee6   :  { %v965_v10 = vadd.f32 %v964_v9, %v2212_v53 }
 0xee7   :  { %v986_v46 = vsel %vm128_vm4, %v970_v6, -inf }
 0xee8   :  { %987 = vmax.xlane.f32.xlu1 %v986_v46  ;;  %v1798_v12 = vpop.f32.mrb[12].mxu0  ;;  %v983_v14 = vsel %vm128_vm4, %v965_v10, -inf  ;;  %v1152_v46 = vld [vmem:[%s2549_s1 + $0xf0] sm:$0xff] }
 0xee9   :  { %v974_v15 = vpop.f32.mrb[13].mxu0  ;;  %984 = vmax.xlane.f32.xlu0 %v983_v14  ;;  %v980_v17 = vadd.f32 %v1798_v12, %v2226_v62  ;;  %v1153_v14 = vld [vmem:[%s2549_s1 + $0xf8] sm:$0xff] }
 0xeea   :  { %v975_v16 = vadd.f32 %v974_v15, %v2220_v59  ;;  %v1154_v15 = vld [vmem:[%s2549_s1 + $0x100] sm:$0xff] }
 0xeeb   :  { %v992_v52 = vsel %vm128_vm4, %v980_v17, -inf }
 0xeec   :  { %v989_v18 = vsel %vm128_vm4, %v975_v16, -inf }
 0xeed   :  { %990 = vmax.xlane.f32.xlu0 %v989_v18 }
 0xef1   :  { %993 = vmax.xlane.f32.xlu0 %v992_v52 }
 0xf75   :  { %v988_v19 = vpop.xlane.xlu1 %987 }
 0xf76   :  { %v996_v53 = vsub.f32 %v970_v6, %v988_v19  ;;  %v985_v20 = vpop.xlane.xlu0 %984 }
 0xf77   :  { %v995_v22 = vsub.f32 %v965_v10, %v985_v20  ;;  %v1151_v10 = vld [vmem:[%s2549_s1 + $0xe8] sm:$0xff] }
 0xf78   :  { %v1001_v23 = vmul.f32 1.442695, %v996_v53  ;;  %v1942_v12 = vpack.c.bf16 %v1152_v46, %v1151_v10  ;;  %v1344_v46 = vld [vmem:[%s2549_s1 + $0x158] sm:$0xff] }
 0xf79   :  { %v999_v24 = vmul.f32 1.442695, %v995_v22 }
 0xf7a   :  { %2045 = vpow2.f32 %v1001_v23  ;;  %v991_v25 = vpop.xlane.xlu0 %990 }
 0xf7b   :  { %2047 = vpow2.f32 %v999_v24  ;;  %v997_v29 = vsub.f32 %v975_v16, %v991_v25  ;;  %v1945_v16 = vpack.c.bf16 %v1154_v15, %v1153_v14 }
 0xf7d   :  { %v1003_v30 = vmul.f32 1.442695, %v997_v29  ;;  %v1158_v29 = vrot.slane %v2339_v7, %v2271_v13 }
 0xf7e   :  { %v994_v59 = vpop.xlane.xlu0 %993 }
 0xf7f   :  { %2049 = vpow2.f32 %v1003_v30  ;;  %v998_v62 = vsub.f32 %v980_v17, %v994_v59 }
 0xf81   :  { %v1005_v32 = vmul.f32 1.442695, %v998_v62 }
 0xf83   :  { %2051 = vpow2.f32 %v1005_v32 }
 0xf84   :  { %v2046_v31 = vpop.eup %2045 }
 0xf85   :  { %v2048_v34 = vpop.eup %2047  ;;  %v1010_v35 = vsel %vm128_vm4, %v2046_v31, 0.0 }
 0xf86   :  { %1011 = vadd.xlane.f32.xlu0 %v1010_v35  ;;  %v1007_v38 = vsel %vm128_vm4, %v2048_v34, 0.0 }
 0xf87   :  { %1008 = vadd.xlane.f32.xlu1 %v1007_v38 }
 0xf89   :  { %v2050_v40 = vpop.eup %2049 }
 0xf8a   :  { %v1013_v41 = vsel %vm128_vm4, %v2050_v40, 0.0 }
 0xf8b   :  { %1014 = vadd.xlane.f32.xlu1 %v1013_v41 }
 0xf8d   :  { %v2052_v43 = vpop.eup %2051 }
 0xf8e   :  { %v1016_v44 = vsel %vm128_vm4, %v2052_v43, 0.0 }
 0xf8f   :  { %1017 = vadd.xlane.f32.xlu0 %v1016_v44  ;;  %v1257_v44 = vld [vmem:[%s2549_s1 + $0x110] sm:$0xff] }
 0xf9c   :  { %2014 = vrot.lane.b32.xlu1 %v2376_v54, %s2098_s6 }
 0xfa5   :  { %2019 = vrot.lane.b32.xlu0 %v2380_v56, %s2098_s6 }
0x1013   :  { %v1012_v39 = vpop.xlane.xlu0 %1011 }
0x1014   :  { %v1009_v47 = vpop.xlane.xlu1 %1008 }
0x1015   :  { %2053 = vrcp.f32 %v1009_v47 }
0x1016   :  { %2055 = vrcp.f32 %v1012_v39  ;;  %v1259_v39 = vld [vmem:[%s2549_s1 + $0x120] sm:$0xff] }
0x1018   :  { %v1015_v42 = vpop.xlane.xlu1 %1014 }
0x1019   :  { %2057 = vrcp.f32 %v1015_v42 }
0x101c   :  { %v2015_v48 = vpop.permute.xlu1 %2014  ;;  %v1018_v28 = vpop.xlane.xlu0 %1017 }
0x101d   :  { %v2017_v51 = vunpack.i.h.bf16 %v2015_v48  ;;  %v2016_v55 = vunpack.i.l.bf16 %v2015_v48  ;;  %2059 = vrcp.f32 %v1018_v28  ;;  %v1338_v48 = vld [vmem:[%s2549_s1 + $0x128] sm:$0xff]  ;;  %v1339_v28 = vld [vmem:[%s2549_s1 + $0x130] sm:$0xff] }
0x101f   :  { %v2054_v57 = vpop.eup %2053  ;;  %v1933_v58 = vpack.c.bf16 %v2017_v51, %v2016_v55  ;;  %v1340_v51 = vld [vmem:[%s2549_s1 + $0x138] sm:$0xff]  ;;  %v1954_v55 = vpack.c.bf16 %v1339_v28, %v1338_v48 }
0x1020   :  { %v2020_v60 = vpop.permute.xlu0 %2019  ;;  %v1023_v61 = vmul.f32 %v2054_v57, %v2048_v34  ;;  %v2056_v1 = vpop.eup %2055  ;;  %v1341_v57 = vld [vmem:[%s2549_s1 + $0x140] sm:$0xff] }
0x1021   :  { %v2022_v63 = vunpack.i.h.bf16 %v2020_v60  ;;  %v2021_v54 = vunpack.i.l.bf16 %v2020_v60  ;;  %1934 = vmatprep.subr.bf16.mxu1 %v1933_v58  ;;  %v1024_v4 = vmul.f32 %v2056_v1, %v2046_v31  ;;  %v1342_v60 = vld [vmem:[%s2549_s1 + $0x148] sm:$0xff] }
0x1022   :  { %1936 = vmatpush3.bf16.msra.mxu1 %v1933_v58  ;;  %1807 = vmatprep.mubr.msk.f32.mxu1 %vm128_vm4, %v1023_v61  ;;  %v1957_v58 = vpack.c.bf16 %v1341_v57, %v1340_v51  ;;  %v1343_v61 = vld [vmem:[%s2549_s1 + $0x150] sm:$0xff] }
0x1023   :  { %v1937_v56 = vpack.c.bf16 %v2022_v63, %v2021_v54  ;;  %v2058_v2 = vpop.eup %2057  ;;  %v1960_v63 = vpack.c.bf16 %v1343_v61, %v1342_v60 }
0x1024   :  { %v1025_v6 = vmul.f32 %v2058_v2, %v2050_v40  ;;  %v1249_v2 = vrot.slane %v2339_v7, %v2314_v49 }
0x1025   :  { %1938 = vmatprep.subr.bf16.mxu1 %v1937_v56 }
0x1026   :  { %1940 = vmatpush3.bf16.msra.mxu1 %v1937_v56 }
0x1027   :  { %1941 = vmatprep.subr.bf16.mxu1 %v2093_v11  ;;  %v2060_v5 = vpop.eup %2059 }
0x1028   :  { %v1026_v9 = vmul.f32 %v2060_v5, %v2052_v43  ;;  %v1256_v43 = vld [vmem:[%s2549_s1 + $0x108] sm:$0xff]  ;;  %v1254_v5 = vrot.slane %v2339_v7, %v591_v50  ;;  %v1263_v50 = vrot.slane %v2339_v7, %v600_v0 }
0x1029   :  { %1808 = vmatmul.mubr.msk.f32.vlgmr.msra.gmra.mrb[10].mxu1 %vm128_vm4, %v1024_v4  ;;  %v1948_v47 = vpack.c.bf16 %v1257_v44, %v1256_v43 }
0x102a   :  { %1810 = vmatprep.mubr.msk.f32.mxu1 %vm128_vm4, %v1025_v6  ;;  %1943 = vmatpush3.bf16.msra.mxu1 %v1942_v12  ;;  %v1345_v12 = vld [vmem:[%s2549_s1 + $0x160] sm:$0xff] }
0x102b   :  { %1944 = vmatprep.subr.bf16.mxu1 %v2093_v11  ;;  %1949 = vmatpush3.bf16.msra.mxu0 %v1948_v47  ;;  %v1963_v14 = vpack.c.bf16 %v1345_v12, %v1344_v46 }
0x102c   :  { %1950 = vmatprep.subr.bf16.mxu0 %v2093_v11 }
0x102d   :  { %1811 = vmatmul.mubr.msk.f32.gmra.mrb[12].mxu1 %vm128_vm4, %v1026_v9 }
0x102e   :  { %1821 = vmatprep.mubr.msk.f32.mxu1 %vm2092_vm1, %v2091_v8  ;;  %1946 = vmatpush3.bf16.msra.mxu1 %v1945_v16 }
0x102f   :  { %1953 = vmatprep.subr.bf16.mxu1 %v2093_v11 }
0x10fc   :  { %v1809_v17 = vpop.f32.mrb[10].mxu1 }
0x10fd   :  { %1137 = vrot.lane.b32.xlu1 %v1809_v17, %s2099_s14  ;;  %v1117_v18 = vpop.f32.mrb[11].mxu1 }
0x1100   :  { %v1812_v52 = vpop.f32.mrb[12].mxu1 }
0x1101   :  { %1145 = vrot.lane.b32.xlu0 %v1812_v52, %s2100_s15  ;;  %v1127_v19 = vpop.f32.mrb[13].mxu1 }
0x1102   :  { %1141 = vrot.lane.b32.xlu1 %v1127_v19, %s2101_s16 }
0x116f   :  { %v1138_v53 = vpop.permute.xlu1 %1137 }
0x1170   :  { %v1148_v20 = vsel %vm16_vm0, %v1117_v18, %v1138_v53 }
0x1173   :  { %v1146_v23 = vpop.permute.xlu0 %1145 }
0x1174   :  { %v1142_v22 = vpop.permute.xlu1 %1141 }
0x1175   :  { %v1149_v24 = vsel %vm484_vm6, %v1148_v20, %v1142_v22 }
0x1176   :  { %v1150_v25 = vsel %vm486_vm7, %v1149_v24, %v1146_v23 }
0x1177   :  { %1822 = vmatmul.mubr.msk.f32.vlgmr.msra.gmra.mrb[14].mxu1 %vm128_vm4, %v1150_v25 }
0x1178   :  { %1851 = vmatprep.mubr.msk.f32.mxu1 %vm2092_vm1, %v2091_v8  ;;  %1955 = vmatpush3.bf16.msra.mxu1 %v1954_v55 }
0x1179   :  { %1956 = vmatprep.subr.bf16.mxu1 %v2093_v11 }
0x117c   :  { %1958 = vmatpush3.bf16.msra.mxu1 %v1957_v58 }
0x117d   :  { %1959 = vmatprep.subr.bf16.mxu1 %v2093_v11 }
0x1180   :  { %1961 = vmatpush3.bf16.msra.mxu1 %v1960_v63 }
0x1181   :  { %1962 = vmatprep.subr.bf16.mxu1 %v2093_v11 }
0x1184   :  { %1964 = vmatpush3.bf16.msra.mxu1 %v1963_v14 }
0x124a   :  { %v1228_v30 = vpop.f32.mrb[14].mxu1 }
0x124b   :  { %v1229_v59 = vadd.f32 %v1228_v30, %v1158_v29  ;;  %v1823_v62 = vpop.f32.mrb[15].mxu1 }
0x124d   :  { %v1232_v32 = vadd.f32 %v1229_v59, %v2366_v45  ;;  %v1258_v45 = vld [vmem:[%s2549_s1 + $0x118] sm:$0xff] }
0x124e   :  { %v1951_v42 = vpack.c.bf16 %v1259_v39, %v1258_v45 }
0x124f   :  { %v1233_v31 = vsel %vm128_vm4, %v1232_v32, 0.0 }
0x1250   :  { %1234 = vadd.xlane.f32.xlu1 %v1233_v31  ;;  %1952 = vmatpush3.bf16.msra.mxu0 %v1951_v42  ;;  %v1473_v42 = vld [vmem:[%s2549_s1 + $0x180] sm:$0xff] }
0x1251   :  { %1965 = vmatprep.subr.bf16.mxu0 %v2093_v11 }
0x12dd   :  { %v1235_v34 = vpop.xlane.xlu1 %1234 }
0x12de   :  { %v1236_v35 = vmul.f32 0.03125, %v1235_v34 }
0x12e0   :  { %v1237_v38 = vsub.f32 %v1232_v32, %v1236_v35  ;;  %v1445_v35 = vrot.slane %v2339_v7, %v783_v37  ;;  %v1472_v37 = vld [vmem:[%s2549_s1 + $0x178] sm:$0xff] }
0x12e1   :  { %v1969_v48 = vpack.c.bf16 %v1473_v42, %v1472_v37 }
0x12e2   :  { %v1238_v40 = vmul.f32 %v1237_v38, %v1237_v38 }
0x12e4   :  { %v1239_v41 = vsel %vm128_vm4, %v1238_v40, 0.0 }
0x12e5   :  { %1240 = vadd.xlane.f32.xlu0 %v1239_v41 }
0x1372   :  { %v1241_v54 = vpop.xlane.xlu0 %1240 }
0x1373   :  { %v1242_v56 = vmul.f32 0.03125, %v1241_v54 }
0x1375   :  { %v1243_v1 = vadd.f32 1e-05, %v1242_v56 }
0x1377   :  { %2061 = vrsqrt.f32 %v1243_v1 }
0x1381   :  { %v2062_v4 = vpop.eup %2061 }
0x1382   :  { %v1245_v6 = vmul.f32 %v2062_v4, %v1237_v38 }
0x1384   :  { %v1250_v9 = vmul.f32 %v1249_v2, %v1245_v6 }
0x1386   :  { %v1255_v10 = vadd.f32 %v1254_v5, %v1250_v9 }
0x1388   :  { %1833 = vmatmul.mubr.msk.f32.vlgmr.msra.gmra.mrb[14].mxu0 %vm128_vm4, %v1255_v10 }
0x1389   :  { %1862 = vmatprep.mubr.msk.f32.mxu0 %vm2092_vm1, %v2091_v8  ;;  %v14_v8 = vld [vmem:[%s2549_s1 + $0x198] sm:$0xff] }
0x138a   :  { %v1349_v52 = vrot.slane %v14_v8, %v2154_v27  ;;  %v1440_v27 = vrot.slane %v2339_v7, %v778_v36  ;;  %v1470_v36 = vld [vmem:[%s2549_s1 + $0x168] sm:$0xff]  ;;  %v1463_v57 = vrot.slane %v14_v8, %v2168_v33  ;;  %v1468_v60 = vrot.slane %v14_v8, %v2271_v13  ;;  %s2102_s1 = smov [#allocation2]  }
0x138b   :  { %v1966_v7 = vpack.c.bf16 %v1471_v26, %v1470_v36  ;;  %v1477_v54 = vrot.slane %v14_v8, %v2314_v49  ;;  %s1560_s12 = sshll.u32 %s2102_s1, 4  ;;  %s1561_s12 = int_to_ptr.vmem [resolvable:$true] %s1560_s12 }
0x138c   :  { %s2067_s0 = scalar_lea.vmem %s1561_s12, 128  ;;  %p2072_p1 = scmp.lt.s32.totalorder %s1561_s12, %s1561_s12 }
0x138d   :  { %1967 = vmatpush3.bf16.msra.mxu0 %v1966_v7  ;;  %p2068_p0 = scmp.ne.s32.totalorder %s1561_s12, %s2067_s0  ;;  %p2073_p2 = scmp.lt.s32.totalorder %s2067_s0, %s2067_s0 }
0x138e   :  { %1968 = vmatprep.subr.bf16.mxu0 %v2093_v11 }
0x138f   :  { %p2074_p3 = por %p2073_p2, %p2072_p1 }
0x1391   :  { %1970 = vmatpush3.bf16.msra.mxu0 %v1969_v48  ;;  %p2075_p4 = pnand %p2074_p3, %p2068_p0 }
0x145b   :  { %v1333_v15 = vpop.f32.mrb[14].mxu0 }
0x145c   :  { %v1334_v16 = vadd.f32 %v1333_v15, %v1263_v50  ;;  %v1834_v17 = vpop.f32.mrb[15].mxu0 }
0x145e   :  { %v1337_v18 = vmax.f32 %v1334_v16, 0.0 }
0x1460   :  { %1852 = vmatmul.mubr.msk.f32.vlgmr.msra.gmra.mrb[16].mxu1 %vm688_vm8, %v1337_v18 }
0x1533   :  { %v1419_v19 = vpop.f32.mrb[16].mxu1 }
0x1534   :  { %v1420_v53 = vadd.f32 %v1419_v19, %v1349_v52  ;;  %v1853_v20 = vpop.f32.mrb[17].mxu1 }
0x1536   :  { %v1423_v22 = vadd.f32 %v1420_v53, %v1255_v10 }
0x1538   :  { %v1424_v23 = vsel %vm128_vm4, %v1423_v22, 0.0 }
0x1539   :  { %1425 = vadd.xlane.f32.xlu0 %v1424_v23 }
0x15c6   :  { %v1426_v0 = vpop.xlane.xlu0 %1425 }
0x15c7   :  { %v1427_v24 = vmul.f32 0.03125, %v1426_v0 }
0x15c9   :  { %v1428_v25 = vsub.f32 %v1423_v22, %v1427_v24 }
0x15cb   :  { %v1429_v29 = vmul.f32 %v1428_v25, %v1428_v25 }
0x15cd   :  { %v1430_v30 = vsel %vm128_vm4, %v1429_v29, 0.0 }
0x15ce   :  { %1431 = vadd.xlane.f32.xlu1 %v1430_v30 }
0x165b   :  { %v1432_v59 = vpop.xlane.xlu1 %1431 }
0x165c   :  { %v1433_v62 = vmul.f32 0.03125, %v1432_v59 }
0x165e   :  { %v1434_v32 = vadd.f32 1e-05, %v1433_v62 }
0x1660   :  { %2063 = vrsqrt.f32 %v1434_v32 }
0x166a   :  { %v2064_v31 = vpop.eup %2063 }
0x166b   :  { %v1436_v34 = vmul.f32 %v2064_v31, %v1428_v25 }
0x166d   :  { %v1441_v38 = vmul.f32 %v1440_v27, %v1436_v34 }
0x166f   :  { %v1446_v40 = vadd.f32 %v1445_v35, %v1441_v38 }
0x1671   :  { %v1447_v41 = vsel %vm128_vm4, %v1446_v40, 0.0 }
0x1672   :  { %1448 = vadd.xlane.f32.xlu0 %v1447_v41 }
0x16ff   :  { %v1449_v43 = vpop.xlane.xlu0 %1448 }
0x1700   :  { %v1450_v44 = vmul.f32 0.03125, %v1449_v43 }
0x1702   :  { %v1451_v47 = vsub.f32 %v1446_v40, %v1450_v44 }
0x1704   :  { %v1452_v45 = vmul.f32 %v1451_v47, %v1451_v47 }
0x1706   :  { %v1453_v39 = vsel %vm128_vm4, %v1452_v45, 0.0 }
0x1707   :  { %1454 = vadd.xlane.f32.xlu1 %v1453_v39 }
0x1794   :  { %v1455_v28 = vpop.xlane.xlu1 %1454 }
0x1795   :  { %v1456_v51 = vmul.f32 0.03125, %v1455_v28 }
0x1797   :  { %v1457_v55 = vadd.f32 1e-05, %v1456_v51 }
0x1799   :  { %2065 = vrsqrt.f32 %v1457_v55 }
0x17a3   :  { %v2066_v58 = vpop.eup %2065 }
0x17a4   :  { %v1459_v11 = vmul.f32 %v2066_v58, %v1451_v47 }
0x17a6   :  { %v1464_v61 = vmul.f32 %v1463_v57, %v1459_v11 }
0x17a8   :  { %v1469_v63 = vadd.f32 %v1468_v60, %v1464_v61 }
0x17aa   :  { %1863 = vmatmul.mubr.msk.f32.vlgmr.msra.gmra.mrb[16].mxu0 %vm128_vm4, %v1469_v63 }
0x187d   :  { %v1547_v56 = vpop.f32.mrb[16].mxu0 }
0x187e   :  { %v1548_v1 = vadd.f32 %v1547_v56, %v1477_v54  ;;  %v1864_v2 = vpop.f32.mrb[17].mxu0 }
0x1880   :  { %v1551_v4 = vmul.f32 %v1548_v1, %v2143_v21 }
0x1882   :  { %v1552_v5 = vadd.f32 %v1551_v4, %v2122_v3 }
0x1884   :  { %1553 = vst.msk [vmem:[#allocation2] sm:$0xff] %vm16_vm0, %v1552_v5 }
0x1885   :  { %2078 = shalt.err (!%p2075_p4)
}
0x1886   :  { %s2079_s18 = scalar_lea.hbm %s2550_s2, 128 }
0x1887   :  { %p2080_p5 = scmp.ne.s32.totalorder %s2550_s2, %s2079_s18  ;;  %p2083_p6 = scmp.lt.u32.totalorder %s2079_s18, %s2550_s2 }
0x1889   :  { %p2085_p7 = pnand %p2083_p6, %p2080_p5 }
0x188b   :  { %2088 = shalt.err (!%p2085_p7)
}
0x188c   :  { %1563 = dma.vmem_to_hbm [thread:$0]  %s1561_s12, 128, %s2550_s2, [#allocation3]  }
0x188d   :  { %2089 = dma.done.wait [#allocation3], 128  }
0x188e   :  { %2090 = vsyncadd [#allocation3], 4294967168 }
0x188f   :  { %1567 = vsyncpa [#allocation3], 1 }

</bundles_post_ra>
